<compile_context>
chip_gen: v6e
topology: v6e:2x2x1
jax: 0.10.0
libtpu: 0.0.40
codegen_flags: <defaults>
</compile_context>

<pallas_src>
import numpy as np
import jax
import jax.numpy as jnp
from jax.experimental import pallas as pl
from jax.experimental.pallas import tpu as pltpu

# Static model hyper-parameters (from the PyTorch __init__).
C_IN, C_MID, C_OUT = 1, 3, 1
K1, K2 = 2, 3
LANE = 128            # minimum lane granularity of a batch tile
MAX_BATCH_TILE = 512  # review: 512-1024 amortizes per-grid-step overhead


def _make_kernel(w1, b1, w2, b2):
    """Bake the (static) conv weights/biases as Python float immediates."""
    w1 = np.asarray(w1, np.float32)
    b1 = np.asarray(b1, np.float32)
    w2 = np.asarray(w2, np.float32)
    b2 = np.asarray(b2, np.float32)

    def kernel(x_ref, out_ref):
        # x_ref:   (C_IN, H, W, TN)    f32 VMEM, batch on the lane axis
        # out_ref: (C_OUT, H2, W2, TN) f32 VMEM
        _, H, W, TN = x_ref.shape
        H1, W1 = H - K1 + 1, W - K1 + 1
        H2, W2 = H1 - K2 + 1, W1 - K2 + 1

        # ---- conv1 (valid, stride 1), bias as accumulator init, then ReLU --
        # Hoist only the sublane-axis (kw, on W) shifts; the kh shift is a
        # cheap leading-axis slice taken inside the accumulate loop.
        x_kw = [[x_ref[ci, :, kw:kw + W1, :] for kw in range(K1)]
                for ci in range(C_IN)]                     # 2 materialized views

        chans = []
        for co in range(C_MID):
            acc = jnp.full((H1, W1, TN), float(b1[co]), jnp.float32)  # bias init
            for ci in range(C_IN):
                for kw in range(K1):
                    v = x_kw[ci][kw]
                    for kh in range(K1):
                        acc = acc + v[kh:kh + H1] * float(w1[co, ci, kh, kw])
            chans.append(jnp.maximum(acc, 0.0))            # ReLU, no stack

        # ---- conv2 (valid, stride 1), bias as accumulator init -------------
        # Only 9 sublane-shifted views (was 27); kh is a leading-axis slice.
        c_kw = [[chans[ci][:, kw:kw + W2, :] for kw in range(K2)]
                for ci in range(C_MID)]

        for co in range(C_OUT):
            acc = jnp.full((H2, W2, TN), float(b2[co]), jnp.float32)
            for ci in range(C_MID):
                for kw in range(K2):
                    v = c_kw[ci][kw]
                    for kh in range(K2):
                        acc = acc + v[kh:kh + H2] * float(w2[co, ci, kh, kw])
            out_ref[co] = acc                              # lane-dense store

    return kernel


def _pick_batch_tile(n):
    """Lane tile for a batch of n: as large as useful, but >=2 grid steps on v7x."""
    np128 = pl.cdiv(n, LANE) * LANE
    tile = min(MAX_BATCH_TILE, np128)
    # v7x has two TensorCores; when the batch allows it, keep >= 2 grid steps
    # so dimension_semantics=("parallel",) can shard steps across both cores.
    if np128 > LANE and np128 // tile < 2:
        tile = max(LANE, ((np128 // 2) // LANE) * LANE)
    return tile


def pruning_test_model_chwn(x_chwn, w1, b1, w2, b2):
    """Primary entry point: activations stay in CHWN (batch on lanes).

    x_chwn: (C_IN, H, W, N) f32.  Returns (C_OUT, H2, W2, N) f32.
    Call this directly from a CHWN surrounding model to avoid wrapper
    transposes (which would re-stream every activation through HBM).
    """
    c, H, W, N = x_chwn.shape
    assert c == C_IN
    H1, W1 = H - K1 + 1, W - K1 + 1
    H2, W2 = H1 - K2 + 1, W1 - K2 + 1

    tile = _pick_batch_tile(N)
    NP = pl.cdiv(N, tile) * tile
    if NP != N:
        x_chwn = jnp.pad(x_chwn, ((0, 0), (0, 0), (0, 0), (0, NP - N)))
    grid = (NP // tile,)

    # Rough per-step VMEM footprint: double-buffered I/O blocks plus the
    # materialized sublane-shifted views and conv1 channel intermediates.
    f = 4  # f32 bytes
    vmem_est = (2 * C_IN * H * W + 2 * C_OUT * H2 * W2
                + C_IN * K1 * H * W1 + C_MID * H1 * W1
                + C_MID * K2 * H1 * W2 + H2 * W2) * tile * f
    vmem_limit = int(min(64 << 20, max(32 << 20, 2 * vmem_est)))

    flops = 2 * NP * (H1 * W1 * C_MID * C_IN * K1 * K1
                      + H2 * W2 * C_OUT * C_MID * K2 * K2)
    bytes_accessed = f * NP * (C_IN * H * W + C_OUT * H2 * W2)

    out = pl.pallas_call(
        _make_kernel(w1, b1, w2, b2),
        out_shape=jax.ShapeDtypeStruct((C_OUT, H2, W2, NP), jnp.float32),
        grid=grid,
        in_specs=[pl.BlockSpec((C_IN, H, W, tile), lambda n: (0, 0, 0, n))],
        out_specs=pl.BlockSpec((C_OUT, H2, W2, tile), lambda n: (0, 0, 0, n)),
        compiler_params=pltpu.CompilerParams(
            dimension_semantics=("parallel",),
            vmem_limit_bytes=vmem_limit),
        cost_estimate=pl.CostEstimate(flops=flops, transcendentals=0,
                                      bytes_accessed=bytes_accessed),
    )(x_chwn)

    return out[..., :N] if NP != N else out


def pruning_test_model(x_nchw, w1, b1, w2, b2):
    """NCHW-compatible wrapper matching the PyTorch module signature.

    NOTE(perf): the NCHW<->CHWN transposes below are separate XLA ops that
    re-read/re-write the whole tensor in HBM; in a real pipeline keep
    activations CHWN end-to-end and call pruning_test_model_chwn instead.
    """
    xt = jnp.transpose(x_nchw, (1, 2, 3, 0))           # NCHW -> CHWN
    out = pruning_test_model_chwn(xt, w1, b1, w2, b2)  # (C_OUT, H2, W2, N)
    return jnp.transpose(out, (3, 0, 1, 2))            # -> NCHW


def make_params():
    # create_conv(1, 3, 2, 9, -2)
    w1 = jnp.full((C_MID, C_IN, K1, K1), 9.0, jnp.float32) + jnp.eye(K1, dtype=jnp.float32)
    b1 = jnp.full((C_MID,), -2.0, jnp.float32)
    # create_conv(3, 1, 3, -10, 0)
    w2 = jnp.full((C_OUT, C_MID, K2, K2), -10.0, jnp.float32) + jnp.eye(K2, dtype=jnp.float32)
    b2 = jnp.zeros((C_OUT,), jnp.float32)
    return w1, b1, w2, b2


def _reference(x, w1, b1, w2, b2):
    """Pure-JAX reference (matches torch Conv2d 'valid' semantics)."""
    dn = jax.lax.conv_dimension_numbers(x.shape, w1.shape, ("NCHW", "OIHW", "NCHW"))
    y = jax.lax.conv_general_dilated(x, w1, (1, 1), "VALID", dimension_numbers=dn)
    y = y + b1[None, :, None, None]
    y = jnp.maximum(y, 0.0)
    dn2 = jax.lax.conv_dimension_numbers(y.shape, w2.shape, ("NCHW", "OIHW", "NCHW"))
    z = jax.lax.conv_general_dilated(y, w2, (1, 1), "VALID", dimension_numbers=dn2)
    return z + b2[None, :, None, None]


if __name__ == "__main__":
    key = jax.random.PRNGKey(0)
    w1, b1, w2, b2 = make_params()

    # jit so the (compat-only) transposes/pad can fuse around the pallas_call;
    # weights are closed over as constants so they stay baked as immediates.
    fwd = jax.jit(lambda x: pruning_test_model(x, w1, b1, w2, b2))

    # Test 1: module-sized input (N=2), grid = (1,).
    x = jax.random.normal(key, (2, 1, 16, 16), dtype=jnp.float32)  # NCHW
    out = jax.block_until_ready(fwd(x))
    ref = _reference(x, w1, b1, w2, b2)
    assert out.shape == (2, 1, 13, 13), out.shape
    assert jnp.allclose(out, ref, atol=1e-4, rtol=1e-4), "mismatch vs reference (N=2)"

    # Test 2: larger batch exercising >1 grid step and padding slice-off.
    x2 = jax.random.normal(jax.random.PRNGKey(1), (130, 1, 16, 16), dtype=jnp.float32)
    out2 = jax.block_until_ready(fwd(x2))
    ref2 = _reference(x2, w1, b1, w2, b2)
    assert out2.shape == (130, 1, 13, 13), out2.shape
    assert jnp.allclose(out2, ref2, atol=1e-4, rtol=1e-4), "mismatch vs reference (N=130)"

    print("KERNEL_OK")
</pallas_src>

<mosaic_0001>
module attributes {stable_mosaic.version = 11 : i64} {
  func.func @kernel(%arg0: i32, %arg1: memref<1x16x16x128xf32, #tpu.memory_space<vmem>>, %arg2: memref<1x13x13x128xf32, #tpu.memory_space<vmem>>) attributes {dimension_semantics = [#tpu.dimension_semantics<parallel>], iteration_bounds = array<i64: 1>, scalar_prefetch = 0 : i64, scratch_operands = 0 : i64, tpu.core_type = #tpu.core_type<tc>, window_params = [{transform_indices = @transform_0, window_bounds = array<i64: 1, 16, 16, 128>}, {transform_indices = @transform_1, window_bounds = array<i64: 1, 13, 13, 128>}]} {
    %c0 = arith.constant 0 : index
    %c0_0 = arith.constant 0 : index
    %c0_1 = arith.constant 0 : index
    %c0_2 = arith.constant 0 : index
    %0 = vector.load %arg1[%c0, %c0_0, %c0_1, %c0_2] : memref<1x16x16x128xf32, #tpu.memory_space<vmem>>, vector<1x16x15x128xf32>
    %1 = vector.shape_cast %0 : vector<1x16x15x128xf32> to vector<16x15x128xf32>
    %c0_3 = arith.constant 0 : index
    %c0_4 = arith.constant 0 : index
    %c1 = arith.constant 1 : index
    %c0_5 = arith.constant 0 : index
    %2 = vector.load %arg1[%c0_3, %c0_4, %c1, %c0_5] : memref<1x16x16x128xf32, #tpu.memory_space<vmem>>, vector<1x16x15x128xf32>
    %3 = vector.shape_cast %2 : vector<1x16x15x128xf32> to vector<16x15x128xf32>
    %cst = arith.constant -2.000000e+00 : f32
    %4 = vector.broadcast %cst : f32 to vector<15x15x128xf32>
    %5 = vector.extract_strided_slice %1 {offsets = [0, 0, 0], sizes = [15, 15, 128], strides = [1, 1, 1]} : vector<16x15x128xf32> to vector<15x15x128xf32>
    %cst_6 = arith.constant 1.000000e+01 : f32
    %6 = vector.broadcast %cst_6 : f32 to vector<15x15x128xf32>
    %7 = arith.mulf %5, %6 : vector<15x15x128xf32>
    %8 = arith.addf %4, %7 : vector<15x15x128xf32>
    %9 = vector.extract_strided_slice %1 {offsets = [1, 0, 0], sizes = [15, 15, 128], strides = [1, 1, 1]} : vector<16x15x128xf32> to vector<15x15x128xf32>
    %cst_7 = arith.constant 9.000000e+00 : f32
    %10 = vector.broadcast %cst_7 : f32 to vector<15x15x128xf32>
    %11 = arith.mulf %9, %10 : vector<15x15x128xf32>
    %12 = arith.addf %8, %11 : vector<15x15x128xf32>
    %13 = vector.extract_strided_slice %3 {offsets = [0, 0, 0], sizes = [15, 15, 128], strides = [1, 1, 1]} : vector<16x15x128xf32> to vector<15x15x128xf32>
    %cst_8 = arith.constant 9.000000e+00 : f32
    %14 = vector.broadcast %cst_8 : f32 to vector<15x15x128xf32>
    %15 = arith.mulf %13, %14 : vector<15x15x128xf32>
    %16 = arith.addf %12, %15 : vector<15x15x128xf32>
    %17 = vector.extract_strided_slice %3 {offsets = [1, 0, 0], sizes = [15, 15, 128], strides = [1, 1, 1]} : vector<16x15x128xf32> to vector<15x15x128xf32>
    %cst_9 = arith.constant 1.000000e+01 : f32
    %18 = vector.broadcast %cst_9 : f32 to vector<15x15x128xf32>
    %19 = arith.mulf %17, %18 : vector<15x15x128xf32>
    %20 = arith.addf %16, %19 : vector<15x15x128xf32>
    %cst_10 = arith.constant 0.000000e+00 : f32
    %21 = vector.broadcast %cst_10 : f32 to vector<15x15x128xf32>
    %22 = arith.maximumf %20, %21 : vector<15x15x128xf32>
    %cst_11 = arith.constant -2.000000e+00 : f32
    %23 = vector.broadcast %cst_11 : f32 to vector<15x15x128xf32>
    %24 = vector.extract_strided_slice %1 {offsets = [0, 0, 0], sizes = [15, 15, 128], strides = [1, 1, 1]} : vector<16x15x128xf32> to vector<15x15x128xf32>
    %cst_12 = arith.constant 1.000000e+01 : f32
    %25 = vector.broadcast %cst_12 : f32 to vector<15x15x128xf32>
    %26 = arith.mulf %24, %25 : vector<15x15x128xf32>
    %27 = arith.addf %23, %26 : vector<15x15x128xf32>
    %28 = vector.extract_strided_slice %1 {offsets = [1, 0, 0], sizes = [15, 15, 128], strides = [1, 1, 1]} : vector<16x15x128xf32> to vector<15x15x128xf32>
    %cst_13 = arith.constant 9.000000e+00 : f32
    %29 = vector.broadcast %cst_13 : f32 to vector<15x15x128xf32>
    %30 = arith.mulf %28, %29 : vector<15x15x128xf32>
    %31 = arith.addf %27, %30 : vector<15x15x128xf32>
    %32 = vector.extract_strided_slice %3 {offsets = [0, 0, 0], sizes = [15, 15, 128], strides = [1, 1, 1]} : vector<16x15x128xf32> to vector<15x15x128xf32>
    %cst_14 = arith.constant 9.000000e+00 : f32
    %33 = vector.broadcast %cst_14 : f32 to vector<15x15x128xf32>
    %34 = arith.mulf %32, %33 : vector<15x15x128xf32>
    %35 = arith.addf %31, %34 : vector<15x15x128xf32>
    %36 = vector.extract_strided_slice %3 {offsets = [1, 0, 0], sizes = [15, 15, 128], strides = [1, 1, 1]} : vector<16x15x128xf32> to vector<15x15x128xf32>
    %cst_15 = arith.constant 1.000000e+01 : f32
    %37 = vector.broadcast %cst_15 : f32 to vector<15x15x128xf32>
    %38 = arith.mulf %36, %37 : vector<15x15x128xf32>
    %39 = arith.addf %35, %38 : vector<15x15x128xf32>
    %cst_16 = arith.constant 0.000000e+00 : f32
    %40 = vector.broadcast %cst_16 : f32 to vector<15x15x128xf32>
    %41 = arith.maximumf %39, %40 : vector<15x15x128xf32>
    %cst_17 = arith.constant -2.000000e+00 : f32
    %42 = vector.broadcast %cst_17 : f32 to vector<15x15x128xf32>
    %43 = vector.extract_strided_slice %1 {offsets = [0, 0, 0], sizes = [15, 15, 128], strides = [1, 1, 1]} : vector<16x15x128xf32> to vector<15x15x128xf32>
    %cst_18 = arith.constant 1.000000e+01 : f32
    %44 = vector.broadcast %cst_18 : f32 to vector<15x15x128xf32>
    %45 = arith.mulf %43, %44 : vector<15x15x128xf32>
    %46 = arith.addf %42, %45 : vector<15x15x128xf32>
    %47 = vector.extract_strided_slice %1 {offsets = [1, 0, 0], sizes = [15, 15, 128], strides = [1, 1, 1]} : vector<16x15x128xf32> to vector<15x15x128xf32>
    %cst_19 = arith.constant 9.000000e+00 : f32
    %48 = vector.broadcast %cst_19 : f32 to vector<15x15x128xf32>
    %49 = arith.mulf %47, %48 : vector<15x15x128xf32>
    %50 = arith.addf %46, %49 : vector<15x15x128xf32>
    %51 = vector.extract_strided_slice %3 {offsets = [0, 0, 0], sizes = [15, 15, 128], strides = [1, 1, 1]} : vector<16x15x128xf32> to vector<15x15x128xf32>
    %cst_20 = arith.constant 9.000000e+00 : f32
    %52 = vector.broadcast %cst_20 : f32 to vector<15x15x128xf32>
    %53 = arith.mulf %51, %52 : vector<15x15x128xf32>
    %54 = arith.addf %50, %53 : vector<15x15x128xf32>
    %55 = vector.extract_strided_slice %3 {offsets = [1, 0, 0], sizes = [15, 15, 128], strides = [1, 1, 1]} : vector<16x15x128xf32> to vector<15x15x128xf32>
    %cst_21 = arith.constant 1.000000e+01 : f32
    %56 = vector.broadcast %cst_21 : f32 to vector<15x15x128xf32>
    %57 = arith.mulf %55, %56 : vector<15x15x128xf32>
    %58 = arith.addf %54, %57 : vector<15x15x128xf32>
    %cst_22 = arith.constant 0.000000e+00 : f32
    %59 = vector.broadcast %cst_22 : f32 to vector<15x15x128xf32>
    %60 = arith.maximumf %58, %59 : vector<15x15x128xf32>
    %61 = vector.extract_strided_slice %22 {offsets = [0, 0, 0], sizes = [15, 13, 128], strides = [1, 1, 1]} : vector<15x15x128xf32> to vector<15x13x128xf32>
    %62 = vector.extract_strided_slice %22 {offsets = [0, 1, 0], sizes = [15, 13, 128], strides = [1, 1, 1]} : vector<15x15x128xf32> to vector<15x13x128xf32>
    %63 = vector.extract_strided_slice %22 {offsets = [0, 2, 0], sizes = [15, 13, 128], strides = [1, 1, 1]} : vector<15x15x128xf32> to vector<15x13x128xf32>
    %64 = vector.extract_strided_slice %41 {offsets = [0, 0, 0], sizes = [15, 13, 128], strides = [1, 1, 1]} : vector<15x15x128xf32> to vector<15x13x128xf32>
    %65 = vector.extract_strided_slice %41 {offsets = [0, 1, 0], sizes = [15, 13, 128], strides = [1, 1, 1]} : vector<15x15x128xf32> to vector<15x13x128xf32>
    %66 = vector.extract_strided_slice %41 {offsets = [0, 2, 0], sizes = [15, 13, 128], strides = [1, 1, 1]} : vector<15x15x128xf32> to vector<15x13x128xf32>
    %67 = vector.extract_strided_slice %60 {offsets = [0, 0, 0], sizes = [15, 13, 128], strides = [1, 1, 1]} : vector<15x15x128xf32> to vector<15x13x128xf32>
    %68 = vector.extract_strided_slice %60 {offsets = [0, 1, 0], sizes = [15, 13, 128], strides = [1, 1, 1]} : vector<15x15x128xf32> to vector<15x13x128xf32>
    %69 = vector.extract_strided_slice %60 {offsets = [0, 2, 0], sizes = [15, 13, 128], strides = [1, 1, 1]} : vector<15x15x128xf32> to vector<15x13x128xf32>
    %cst_23 = arith.constant 0.000000e+00 : f32
    %70 = vector.broadcast %cst_23 : f32 to vector<13x13x128xf32>
    %71 = vector.extract_strided_slice %61 {offsets = [0, 0, 0], sizes = [13, 13, 128], strides = [1, 1, 1]} : vector<15x13x128xf32> to vector<13x13x128xf32>
    %cst_24 = arith.constant -9.000000e+00 : f32
    %72 = vector.broadcast %cst_24 : f32 to vector<13x13x128xf32>
    %73 = arith.mulf %71, %72 : vector<13x13x128xf32>
    %74 = arith.addf %70, %73 : vector<13x13x128xf32>
    %75 = vector.extract_strided_slice %61 {offsets = [1, 0, 0], sizes = [13, 13, 128], strides = [1, 1, 1]} : vector<15x13x128xf32> to vector<13x13x128xf32>
    %cst_25 = arith.constant -1.000000e+01 : f32
    %76 = vector.broadcast %cst_25 : f32 to vector<13x13x128xf32>
    %77 = arith.mulf %75, %76 : vector<13x13x128xf32>
    %78 = arith.addf %74, %77 : vector<13x13x128xf32>
    %79 = vector.extract_strided_slice %61 {offsets = [2, 0, 0], sizes = [13, 13, 128], strides = [1, 1, 1]} : vector<15x13x128xf32> to vector<13x13x128xf32>
    %cst_26 = arith.constant -1.000000e+01 : f32
    %80 = vector.broadcast %cst_26 : f32 to vector<13x13x128xf32>
    %81 = arith.mulf %79, %80 : vector<13x13x128xf32>
    %82 = arith.addf %78, %81 : vector<13x13x128xf32>
    %83 = vector.extract_strided_slice %62 {offsets = [0, 0, 0], sizes = [13, 13, 128], strides = [1, 1, 1]} : vector<15x13x128xf32> to vector<13x13x128xf32>
    %cst_27 = arith.constant -1.000000e+01 : f32
    %84 = vector.broadcast %cst_27 : f32 to vector<13x13x128xf32>
    %85 = arith.mulf %83, %84 : vector<13x13x128xf32>
    %86 = arith.addf %82, %85 : vector<13x13x128xf32>
    %87 = vector.extract_strided_slice %62 {offsets = [1, 0, 0], sizes = [13, 13, 128], strides = [1, 1, 1]} : vector<15x13x128xf32> to vector<13x13x128xf32>
    %cst_28 = arith.constant -9.000000e+00 : f32
    %88 = vector.broadcast %cst_28 : f32 to vector<13x13x128xf32>
    %89 = arith.mulf %87, %88 : vector<13x13x128xf32>
    %90 = arith.addf %86, %89 : vector<13x13x128xf32>
    %91 = vector.extract_strided_slice %62 {offsets = [2, 0, 0], sizes = [13, 13, 128], strides = [1, 1, 1]} : vector<15x13x128xf32> to vector<13x13x128xf32>
    %cst_29 = arith.constant -1.000000e+01 : f32
    %92 = vector.broadcast %cst_29 : f32 to vector<13x13x128xf32>
    %93 = arith.mulf %91, %92 : vector<13x13x128xf32>
    %94 = arith.addf %90, %93 : vector<13x13x128xf32>
    %95 = vector.extract_strided_slice %63 {offsets = [0, 0, 0], sizes = [13, 13, 128], strides = [1, 1, 1]} : vector<15x13x128xf32> to vector<13x13x128xf32>
    %cst_30 = arith.constant -1.000000e+01 : f32
    %96 = vector.broadcast %cst_30 : f32 to vector<13x13x128xf32>
    %97 = arith.mulf %95, %96 : vector<13x13x128xf32>
    %98 = arith.addf %94, %97 : vector<13x13x128xf32>
    %99 = vector.extract_strided_slice %63 {offsets = [1, 0, 0], sizes = [13, 13, 128], strides = [1, 1, 1]} : vector<15x13x128xf32> to vector<13x13x128xf32>
    %cst_31 = arith.constant -1.000000e+01 : f32
    %100 = vector.broadcast %cst_31 : f32 to vector<13x13x128xf32>
    %101 = arith.mulf %99, %100 : vector<13x13x128xf32>
    %102 = arith.addf %98, %101 : vector<13x13x128xf32>
    %103 = vector.extract_strided_slice %63 {offsets = [2, 0, 0], sizes = [13, 13, 128], strides = [1, 1, 1]} : vector<15x13x128xf32> to vector<13x13x128xf32>
    %cst_32 = arith.constant -9.000000e+00 : f32
    %104 = vector.broadcast %cst_32 : f32 to vector<13x13x128xf32>
    %105 = arith.mulf %103, %104 : vector<13x13x128xf32>
    %106 = arith.addf %102, %105 : vector<13x13x128xf32>
    %107 = vector.extract_strided_slice %64 {offsets = [0, 0, 0], sizes = [13, 13, 128], strides = [1, 1, 1]} : vector<15x13x128xf32> to vector<13x13x128xf32>
    %cst_33 = arith.constant -9.000000e+00 : f32
    %108 = vector.broadcast %cst_33 : f32 to vector<13x13x128xf32>
    %109 = arith.mulf %107, %108 : vector<13x13x128xf32>
    %110 = arith.addf %106, %109 : vector<13x13x128xf32>
    %111 = vector.extract_strided_slice %64 {offsets = [1, 0, 0], sizes = [13, 13, 128], strides = [1, 1, 1]} : vector<15x13x128xf32> to vector<13x13x128xf32>
    %cst_34 = arith.constant -1.000000e+01 : f32
    %112 = vector.broadcast %cst_34 : f32 to vector<13x13x128xf32>
    %113 = arith.mulf %111, %112 : vector<13x13x128xf32>
    %114 = arith.addf %110, %113 : vector<13x13x128xf32>
    %115 = vector.extract_strided_slice %64 {offsets = [2, 0, 0], sizes = [13, 13, 128], strides = [1, 1, 1]} : vector<15x13x128xf32> to vector<13x13x128xf32>
    %cst_35 = arith.constant -1.000000e+01 : f32
    %116 = vector.broadcast %cst_35 : f32 to vector<13x13x128xf32>
    %117 = arith.mulf %115, %116 : vector<13x13x128xf32>
    %118 = arith.addf %114, %117 : vector<13x13x128xf32>
    %119 = vector.extract_strided_slice %65 {offsets = [0, 0, 0], sizes = [13, 13, 128], strides = [1, 1, 1]} : vector<15x13x128xf32> to vector<13x13x128xf32>
    %cst_36 = arith.constant -1.000000e+01 : f32
    %120 = vector.broadcast %cst_36 : f32 to vector<13x13x128xf32>
    %121 = arith.mulf %119, %120 : vector<13x13x128xf32>
    %122 = arith.addf %118, %121 : vector<13x13x128xf32>
    %123 = vector.extract_strided_slice %65 {offsets = [1, 0, 0], sizes = [13, 13, 128], strides = [1, 1, 1]} : vector<15x13x128xf32> to vector<13x13x128xf32>
    %cst_37 = arith.constant -9.000000e+00 : f32
    %124 = vector.broadcast %cst_37 : f32 to vector<13x13x128xf32>
    %125 = arith.mulf %123, %124 : vector<13x13x128xf32>
    %126 = arith.addf %122, %125 : vector<13x13x128xf32>
    %127 = vector.extract_strided_slice %65 {offsets = [2, 0, 0], sizes = [13, 13, 128], strides = [1, 1, 1]} : vector<15x13x128xf32> to vector<13x13x128xf32>
    %cst_38 = arith.constant -1.000000e+01 : f32
    %128 = vector.broadcast %cst_38 : f32 to vector<13x13x128xf32>
    %129 = arith.mulf %127, %128 : vector<13x13x128xf32>
    %130 = arith.addf %126, %129 : vector<13x13x128xf32>
    %131 = vector.extract_strided_slice %66 {offsets = [0, 0, 0], sizes = [13, 13, 128], strides = [1, 1, 1]} : vector<15x13x128xf32> to vector<13x13x128xf32>
    %cst_39 = arith.constant -1.000000e+01 : f32
    %132 = vector.broadcast %cst_39 : f32 to vector<13x13x128xf32>
    %133 = arith.mulf %131, %132 : vector<13x13x128xf32>
    %134 = arith.addf %130, %133 : vector<13x13x128xf32>
    %135 = vector.extract_strided_slice %66 {offsets = [1, 0, 0], sizes = [13, 13, 128], strides = [1, 1, 1]} : vector<15x13x128xf32> to vector<13x13x128xf32>
    %cst_40 = arith.constant -1.000000e+01 : f32
    %136 = vector.broadcast %cst_40 : f32 to vector<13x13x128xf32>
    %137 = arith.mulf %135, %136 : vector<13x13x128xf32>
    %138 = arith.addf %134, %137 : vector<13x13x128xf32>
    %139 = vector.extract_strided_slice %66 {offsets = [2, 0, 0], sizes = [13, 13, 128], strides = [1, 1, 1]} : vector<15x13x128xf32> to vector<13x13x128xf32>
    %cst_41 = arith.constant -9.000000e+00 : f32
    %140 = vector.broadcast %cst_41 : f32 to vector<13x13x128xf32>
    %141 = arith.mulf %139, %140 : vector<13x13x128xf32>
    %142 = arith.addf %138, %141 : vector<13x13x128xf32>
    %143 = vector.extract_strided_slice %67 {offsets = [0, 0, 0], sizes = [13, 13, 128], strides = [1, 1, 1]} : vector<15x13x128xf32> to vector<13x13x128xf32>
    %cst_42 = arith.constant -9.000000e+00 : f32
    %144 = vector.broadcast %cst_42 : f32 to vector<13x13x128xf32>
    %145 = arith.mulf %143, %144 : vector<13x13x128xf32>
    %146 = arith.addf %142, %145 : vector<13x13x128xf32>
    %147 = vector.extract_strided_slice %67 {offsets = [1, 0, 0], sizes = [13, 13, 128], strides = [1, 1, 1]} : vector<15x13x128xf32> to vector<13x13x128xf32>
    %cst_43 = arith.constant -1.000000e+01 : f32
    %148 = vector.broadcast %cst_43 : f32 to vector<13x13x128xf32>
    %149 = arith.mulf %147, %148 : vector<13x13x128xf32>
    %150 = arith.addf %146, %149 : vector<13x13x128xf32>
    %151 = vector.extract_strided_slice %67 {offsets = [2, 0, 0], sizes = [13, 13, 128], strides = [1, 1, 1]} : vector<15x13x128xf32> to vector<13x13x128xf32>
    %cst_44 = arith.constant -1.000000e+01 : f32
    %152 = vector.broadcast %cst_44 : f32 to vector<13x13x128xf32>
    %153 = arith.mulf %151, %152 : vector<13x13x128xf32>
    %154 = arith.addf %150, %153 : vector<13x13x128xf32>
    %155 = vector.extract_strided_slice %68 {offsets = [0, 0, 0], sizes = [13, 13, 128], strides = [1, 1, 1]} : vector<15x13x128xf32> to vector<13x13x128xf32>
    %cst_45 = arith.constant -1.000000e+01 : f32
    %156 = vector.broadcast %cst_45 : f32 to vector<13x13x128xf32>
    %157 = arith.mulf %155, %156 : vector<13x13x128xf32>
    %158 = arith.addf %154, %157 : vector<13x13x128xf32>
    %159 = vector.extract_strided_slice %68 {offsets = [1, 0, 0], sizes = [13, 13, 128], strides = [1, 1, 1]} : vector<15x13x128xf32> to vector<13x13x128xf32>
    %cst_46 = arith.constant -9.000000e+00 : f32
    %160 = vector.broadcast %cst_46 : f32 to vector<13x13x128xf32>
    %161 = arith.mulf %159, %160 : vector<13x13x128xf32>
    %162 = arith.addf %158, %161 : vector<13x13x128xf32>
    %163 = vector.extract_strided_slice %68 {offsets = [2, 0, 0], sizes = [13, 13, 128], strides = [1, 1, 1]} : vector<15x13x128xf32> to vector<13x13x128xf32>
    %cst_47 = arith.constant -1.000000e+01 : f32
    %164 = vector.broadcast %cst_47 : f32 to vector<13x13x128xf32>
    %165 = arith.mulf %163, %164 : vector<13x13x128xf32>
    %166 = arith.addf %162, %165 : vector<13x13x128xf32>
    %167 = vector.extract_strided_slice %69 {offsets = [0, 0, 0], sizes = [13, 13, 128], strides = [1, 1, 1]} : vector<15x13x128xf32> to vector<13x13x128xf32>
    %cst_48 = arith.constant -1.000000e+01 : f32
    %168 = vector.broadcast %cst_48 : f32 to vector<13x13x128xf32>
    %169 = arith.mulf %167, %168 : vector<13x13x128xf32>
    %170 = arith.addf %166, %169 : vector<13x13x128xf32>
    %171 = vector.extract_strided_slice %69 {offsets = [1, 0, 0], sizes = [13, 13, 128], strides = [1, 1, 1]} : vector<15x13x128xf32> to vector<13x13x128xf32>
    %cst_49 = arith.constant -1.000000e+01 : f32
    %172 = vector.broadcast %cst_49 : f32 to vector<13x13x128xf32>
    %173 = arith.mulf %171, %172 : vector<13x13x128xf32>
    %174 = arith.addf %170, %173 : vector<13x13x128xf32>
    %175 = vector.extract_strided_slice %69 {offsets = [2, 0, 0], sizes = [13, 13, 128], strides = [1, 1, 1]} : vector<15x13x128xf32> to vector<13x13x128xf32>
    %cst_50 = arith.constant -9.000000e+00 : f32
    %176 = vector.broadcast %cst_50 : f32 to vector<13x13x128xf32>
    %177 = arith.mulf %175, %176 : vector<13x13x128xf32>
    %178 = arith.addf %174, %177 : vector<13x13x128xf32>
    %c0_51 = arith.constant 0 : index
    %c0_52 = arith.constant 0 : index
    %c0_53 = arith.constant 0 : index
    %c0_54 = arith.constant 0 : index
    %179 = vector.load %arg2[%c0_51, %c0_52, %c0_53, %c0_54] : memref<1x13x13x128xf32, #tpu.memory_space<vmem>>, vector<1x13x13x128xf32>
    %180 = vector.shape_cast %179 : vector<1x13x13x128xf32> to vector<13x13x128xf32>
    %181 = vector.shape_cast %178 : vector<13x13x128xf32> to vector<1x13x13x128xf32>
    tpu.vector_store %arg2[%c0_51, %c0_52, %c0_53, %c0_54], %181 {strides = array<i32>} : memref<1x13x13x128xf32, #tpu.memory_space<vmem>>, vector<1x13x13x128xf32>,
    return
  }
  func.func @transform_0(%arg0: i32) -> (i32, i32, i32, i32) {
    %c0_i32 = arith.constant 0 : i32
    %c0_i32_0 = arith.constant 0 : i32
    %c0_i32_1 = arith.constant 0 : i32
    %c0_i32_2 = arith.constant 0 : i32
    return %c0_i32, %c0_i32_0, %c0_i32_1, %arg0 : i32, i32, i32, i32
  }
  func.func @transform_1(%arg0: i32) -> (i32, i32, i32, i32) {
    %c0_i32 = arith.constant 0 : i32
    %c0_i32_0 = arith.constant 0 : i32
    %c0_i32_1 = arith.constant 0 : i32
    %c0_i32_2 = arith.constant 0 : i32
    return %c0_i32, %c0_i32_0, %c0_i32_1, %arg0 : i32, i32, i32, i32
  }
}

</mosaic_0001>

<bundles_post_ra>
// kernel: _lambda_.1
= control target key start
LH: loop header
LB: loop body
LE: loop exit
PB: predicated region body
PF: predicated region fallthrough
CT: control target
= control target key end

     0   :  { %vm502_vm0 = vcmask 1046528   ;;  %vm753_vm1 = vcmask 1045504   ;;  %s3162_s0 = inlined_call_operand.vmem [shape: f32[1,16,16,128], index: 0, kind: input, shape index: {}]   ;;  %s3163_s1 = inlined_call_operand.vmem [shape: f32[1,13,13,128], index: 1, kind: output, shape index: {}]  }
   0x1   :  { %v8_v0 = vld [vmem:[%s3162_s0] sm:$0xff]  ;;  %v9_v1 = vld [vmem:[%s3162_s0 + $0x8] sm:$0x7f]  ;;  %v10_v2 = vld [vmem:[%s3162_s0 + $0x10] sm:$0xff] }
   0x2   :  { %v11_v3 = vld [vmem:[%s3162_s0 + $0x18] sm:$0x7f]  ;;  %v12_v4 = vld [vmem:[%s3162_s0 + $0x20] sm:$0xff]  ;;  %v13_v5 = vld [vmem:[%s3162_s0 + $0x28] sm:$0x7f]  ;;  %v72_v6 = vmul.f32 10.0, %v8_v0 }
   0x3   :  { %v73_v7 = vmul.f32 10.0, %v9_v1  ;;  %v74_v8 = vmul.f32 10.0, %v10_v2  ;;  %v75_v9 = vmul.f32 10.0, %v11_v3  ;;  %v14_v10 = vld [vmem:[%s3162_s0 + $0x30] sm:$0xff]  ;;  %v15_v11 = vld [vmem:[%s3162_s0 + $0x38] sm:$0x7f] }
   0x4   :  { %v40_v12 = vld [vmem:[%s3162_s0 + $0x1] sm:$0xff]  ;;  %v41_v13 = vld [vmem:[%s3162_s0 + $0x9] sm:$0x7f]  ;;  %v76_v14 = vmul.f32 10.0, %v12_v4  ;;  %v77_v15 = vmul.f32 10.0, %v13_v5  ;;  %v102_v17 = vadd.f32 -2.0, %v72_v6 }
   0x5   :  { %v43_v16 = vld [vmem:[%s3162_s0 + $0x19] sm:$0x7f]  ;;  %v103_v18 = vadd.f32 -2.0, %v73_v7  ;;  %v104_v19 = vadd.f32 -2.0, %v74_v8  ;;  %v105_v20 = vadd.f32 -2.0, %v75_v9  ;;  %v42_v21 = vld [vmem:[%s3162_s0 + $0x11] sm:$0xff] }
   0x6   :  { %v44_v22 = vld [vmem:[%s3162_s0 + $0x21] sm:$0xff]  ;;  %v106_v23 = vadd.f32 -2.0, %v76_v14  ;;  %v107_v24 = vadd.f32 -2.0, %v77_v15  ;;  %v132_v25 = vmul.f32 9.0, %v10_v2  ;;  %v133_v26 = vmul.f32 9.0, %v11_v3  ;;  %v1524_v48 = vld [vmem:[%s3162_s0 + $0x31] sm:$0xff] }
   0x7   :  { %v45_v27 = vld [vmem:[%s3162_s0 + $0x29] sm:$0x7f]  ;;  %v134_v28 = vmul.f32 9.0, %v12_v4  ;;  %v135_v29 = vmul.f32 9.0, %v13_v5  ;;  %v136_v30 = vmul.f32 9.0, %v14_v10  ;;  %v137_v31 = vmul.f32 9.0, %v15_v11 }
   0x8   :  { %v162_v32 = vadd.f32 %v132_v25, %v102_v17  ;;  %v163_v33 = vadd.f32 %v133_v26, %v103_v18  ;;  %v192_v34 = vmul.f32 9.0, %v40_v12  ;;  %v193_v35 = vmul.f32 9.0, %v41_v13  ;;  %v1529_v49 = vld [vmem:[%s3162_s0 + $0x39] sm:$0x7f] }
   0x9   :  { %v164_v36 = vadd.f32 %v134_v28, %v104_v19  ;;  %v165_v37 = vadd.f32 %v135_v29, %v105_v20  ;;  %v166_v38 = vadd.f32 %v136_v30, %v106_v23  ;;  %v167_v39 = vadd.f32 %v137_v31, %v107_v24 }
   0xa   :  { %v194_v40 = vmul.f32 9.0, %v42_v21  ;;  %v195_v41 = vmul.f32 9.0, %v43_v16  ;;  %v196_v42 = vmul.f32 9.0, %v44_v22  ;;  %v197_v43 = vmul.f32 9.0, %v45_v27 }
   0xb   :  { %v222_v44 = vadd.f32 %v192_v34, %v162_v32  ;;  %v223_v45 = vadd.f32 %v193_v35, %v163_v33  ;;  %v252_v46 = vmul.f32 10.0, %v42_v21  ;;  %v253_v47 = vmul.f32 10.0, %v43_v16 }
   0xc   :  { %v224_v50 = vadd.f32 %v194_v40, %v164_v36  ;;  %v225_v51 = vadd.f32 %v195_v41, %v165_v37  ;;  %v226_v52 = vadd.f32 %v196_v42, %v166_v38  ;;  %v227_v53 = vadd.f32 %v197_v43, %v167_v39  ;;  %v16_v42 = vld [vmem:[%s3162_s0 + $0x40] sm:$0xff]  ;;  %v17_v43 = vld [vmem:[%s3162_s0 + $0x48] sm:$0x7f] }
   0xd   :  { %v254_v54 = vmul.f32 10.0, %v44_v22  ;;  %v255_v55 = vmul.f32 10.0, %v45_v27  ;;  %v256_v56 = vmul.f32 10.0, %v1524_v48  ;;  %v257_v57 = vmul.f32 10.0, %v1529_v49 }
   0xe   :  { %v282_v58 = vadd.f32 %v252_v46, %v222_v44  ;;  %v283_v59 = vadd.f32 %v253_v47, %v223_v45  ;;  %v78_v60 = vmul.f32 10.0, %v14_v10  ;;  %v79_v61 = vmul.f32 10.0, %v15_v11 }
   0xf   :  { %v284_v62 = vadd.f32 %v254_v54, %v224_v50  ;;  %v285_v63 = vadd.f32 %v255_v55, %v225_v51  ;;  %v286_v0 = vadd.f32 %v256_v56, %v226_v52  ;;  %v287_v1 = vadd.f32 %v257_v57, %v227_v53  ;;  %v48_v56 = vld [vmem:[%s3162_s0 + $0x41] sm:$0xff]  ;;  %v1621_v57 = vld [vmem:[%s3162_s0 + $0x49] sm:$0x7f] }
  0x10   :  { %v312_v2 = vmax.f32 %v282_v58, 0.0  ;;  %v313_v3 = vmax.f32 %v283_v59, 0.0  ;;  %v108_v4 = vadd.f32 -2.0, %v78_v60  ;;  %v109_v5 = vadd.f32 -2.0, %v79_v61 }
  0x11   :  { %v314_v6 = vmax.f32 %v284_v62, 0.0  ;;  %v315_v7 = vmax.f32 %v285_v63, 0.0  ;;  %v316_v8 = vmax.f32 %v286_v0, 0.0  ;;  %v317_v9 = vmax.f32 %v287_v1, 0.0 }
  0x12   :  { %v1533_v12 = vmul.f32 -9.0, %v312_v2  ;;  %v1535_v13 = vmul.f32 -9.0, %v313_v3  ;;  %v474_v14 = vmul.f32 -10.0, %v312_v2  ;;  %v475_v15 = vmul.f32 -10.0, %v313_v3 }
  0x13   :  { %v1537_v10 = vmul.f32 -9.0, %v314_v6  ;;  %v1539_v11 = vmul.f32 -9.0, %v315_v7  ;;  %v1541_v16 = vmul.f32 -9.0, %v316_v8  ;;  %v1543_v17 = vmul.f32 -9.0, %v317_v9 }
  0x14   :  { %v1545_v18 = vmul.f32 -10.0, %v314_v6  ;;  %v1547_v19 = vmul.f32 -10.0, %v315_v7  ;;  %v1549_v20 = vmul.f32 -10.0, %v316_v8  ;;  %v1551_v21 = vmul.f32 -10.0, %v317_v9 }
  0x15   :  { %v503_v22 = vrot.slane %v474_v14, 1  ;;  %v1553_v23 = vrot.slane %v475_v15, 1  ;;  %v622_v24 = vrot.slane %v1537_v10, 1  ;;  %v1557_v25 = vrot.slane %v1539_v11, 1 }
  0x16   :  { %v420_v26 = vadd.f32 %v1545_v18, %v1533_v12  ;;  %v421_v27 = vadd.f32 %v1547_v19, %v1535_v13  ;;  %v509_v28 = vrot.slane %v1549_v20, 1  ;;  %v1565_v29 = vrot.slane %v1551_v21, 1 }
  0x17   :  { %v1569_v30 = vsel %vm502_vm0, %v503_v22, %v1553_v23  ;;  %v1573_v31 = vsel %vm502_vm0, %v622_v24, %v1557_v25  ;;  %v754_v32 = vrot.slane %v474_v14, 2  ;;  %v1575_v33 = vrot.slane %v475_v15, 2 }
  0x18   :  { %v448_v34 = vadd.f32 %v420_v26, %v1549_v20  ;;  %v449_v35 = vadd.f32 %v421_v27, %v1551_v21  ;;  %v1581_v36 = vsel %vm502_vm0, %v509_v28, %v1565_v29  ;;  %v757_v37 = vrot.slane %v1545_v18, 2 }
  0x19   :  { %v1586_v38 = vsel %vm753_vm1, %v754_v32, %v1575_v33  ;;  %v1589_v39 = vrot.slane %v1547_v19, 2  ;;  %v880_v40 = vrot.slane %v1541_v16, 2  ;;  %v1593_v41 = vrot.slane %v1543_v17, 2 }
  0x1a   :  { %v568_v44 = vadd.f32 %v1569_v30, %v448_v34  ;;  %v569_v45 = vadd.f32 %v1553_v23, %v449_v35  ;;  %v138_v46 = vmul.f32 9.0, %v16_v42  ;;  %v139_v47 = vmul.f32 9.0, %v17_v43  ;;  %v1657_v34 = vld [vmem:[%s3162_s0 + $0x50] sm:$0xff] }
  0x1b   :  { %v1605_v50 = vsel %vm753_vm1, %v757_v37, %v1589_v39  ;;  %v1609_v51 = vsel %vm753_vm1, %v880_v40, %v1593_v41  ;;  %v198_v52 = vmul.f32 9.0, %v1524_v48  ;;  %v199_v53 = vmul.f32 9.0, %v1529_v49 }
  0x1c   :  { %v687_v54 = vadd.f32 %v1573_v31, %v568_v44  ;;  %v688_v55 = vadd.f32 %v1557_v25, %v569_v45  ;;  %v168_v58 = vadd.f32 %v138_v46, %v108_v4  ;;  %v169_v59 = vadd.f32 %v139_v47, %v109_v5 }
  0x1d   :  { %v258_v60 = vmul.f32 10.0, %v48_v56  ;;  %v259_v48 = vmul.f32 10.0, %v1621_v57  ;;  %v422_v49 = vadd.f32 %v1549_v20, %v1537_v10  ;;  %v423_v61 = vadd.f32 %v1551_v21, %v1539_v11 }
  0x1e   :  { %v727_v62 = vadd.f32 %v687_v54, %v1581_v36  ;;  %v728_v63 = vadd.f32 %v688_v55, %v1565_v29  ;;  %v228_v0 = vadd.f32 %v198_v52, %v168_v58  ;;  %v229_v1 = vadd.f32 %v199_v53, %v169_v59 }
  0x1f   :  { %v506_v2 = vrot.slane %v1545_v18, 1  ;;  %v1632_v3 = vrot.slane %v1547_v19, 1  ;;  %v625_v4 = vrot.slane %v1541_v16, 1  ;;  %v1636_v5 = vrot.slane %v1543_v17, 1 }
  0x20   :  { %v819_v6 = vadd.f32 %v1586_v38, %v727_v62  ;;  %v820_v7 = vadd.f32 %v1575_v33, %v728_v63  ;;  %v288_v8 = vadd.f32 %v258_v60, %v228_v0  ;;  %v289_v9 = vadd.f32 %v259_v48, %v229_v1  ;;  %v1689_v1 = vld [vmem:[%s3162_s0 + $0x58] sm:$0x7f] }
  0x21   :  { %v1642_v14 = vsel %vm502_vm0, %v506_v2, %v1632_v3  ;;  %v1646_v15 = vsel %vm502_vm0, %v625_v4, %v1636_v5  ;;  %v760_v22 = vrot.slane %v1549_v20, 2  ;;  %v1650_v24 = vrot.slane %v1551_v21, 2 }
  0x22   :  { %v850_v26 = vadd.f32 %v819_v6, %v1605_v50  ;;  %v851_v27 = vadd.f32 %v820_v7, %v1589_v39  ;;  %v318_v28 = vmax.f32 %v288_v8, 0.0  ;;  %v319_v32 = vmax.f32 %v289_v9, 0.0 }
  0x23   :  { %v1661_v35 = vsel %vm753_vm1, %v760_v22, %v1650_v24  ;;  %v80_v37 = vmul.f32 10.0, %v16_v42  ;;  %v81_v40 = vmul.f32 10.0, %v17_v43  ;;  %v140_v44 = vmul.f32 9.0, %v1657_v34 }
  0x24   :  { %v945_v45 = vadd.f32 %v1609_v51, %v850_v26  ;;  %v946_v46 = vadd.f32 %v1593_v41, %v851_v27  ;;  %v1666_v47 = vmul.f32 -9.0, %v318_v28  ;;  %v1668_v52 = vmul.f32 -9.0, %v319_v32  ;;  %v1709_v27 = vld [vmem:[%s3162_s0 + $0x51] sm:$0xff] }
  0x25   :  { %v1670_v53 = vmul.f32 -10.0, %v318_v28  ;;  %v1672_v54 = vmul.f32 -10.0, %v319_v32  ;;  %v110_v55 = vadd.f32 -2.0, %v80_v37  ;;  %v111_v58 = vadd.f32 -2.0, %v81_v40 }
  0x26   :  { %3166 = vst [vmem:[#allocation2_spill] sm:$0xff] %v1668_v52  ;;  %v971_v59 = vadd.f32 %v945_v45, %v1533_v12  ;;  %v972_v42 = vadd.f32 %v946_v46, %v1535_v13  ;;  %v883_v43 = vrot.slane %v1666_v47, 2  ;;  %v1678_v60 = vrot.slane %v1668_v52, 2  ;;  %v1716_v45 = vld [vmem:[%s3162_s0 + $0x59] sm:$0x7f] }
  0x27   :  { %v450_v48 = vadd.f32 %v422_v49, %v1670_v53  ;;  %v451_v62 = vadd.f32 %v423_v61, %v1672_v54  ;;  %v512_v63 = vrot.slane %v1670_v53, 1  ;;  %v1684_v0 = vrot.slane %v1672_v54, 1 }
  0x28   :  { %v997_v2 = vadd.f32 %v971_v59, %v1545_v18  ;;  %v998_v4 = vadd.f32 %v972_v42, %v1547_v19  ;;  %v1695_v6 = vsel %vm753_vm1, %v883_v43, %v1678_v60  ;;  %v141_v49 = vmul.f32 9.0, %v1689_v1 }
  0x29   :  { %v1700_v61 = vsel %vm502_vm0, %v512_v63, %v1684_v0  ;;  %v570_v7 = vadd.f32 %v1642_v14, %v450_v48  ;;  %v571_v8 = vadd.f32 %v1632_v3, %v451_v62  ;;  %v170_v9 = vadd.f32 %v140_v44, %v110_v55 }
  0x2a   :  { %v1023_v22 = vadd.f32 %v997_v2, %v1549_v20  ;;  %v1024_v26 = vadd.f32 %v998_v4, %v1551_v21  ;;  %v171_v28 = vadd.f32 %v141_v49, %v111_v58  ;;  %v200_v32 = vmul.f32 9.0, %v48_v56 }
  0x2b   :  { %v689_v37 = vadd.f32 %v1646_v15, %v570_v7  ;;  %v690_v40 = vadd.f32 %v1636_v5, %v571_v8  ;;  %v201_v44 = vmul.f32 9.0, %v1621_v57  ;;  %v260_v46 = vmul.f32 10.0, %v1709_v27 }
  0x2c   :  { %v1049_v55 = vadd.f32 %v1023_v22, %v1569_v30  ;;  %v1050_v59 = vadd.f32 %v1024_v26, %v1553_v23  ;;  %v230_v42 = vadd.f32 %v200_v32, %v170_v9  ;;  %v261_v56 = vmul.f32 10.0, %v1716_v45 }
  0x2d   :  { %v729_v58 = vadd.f32 %v689_v37, %v1700_v61  ;;  %v730_v43 = vadd.f32 %v690_v40, %v1684_v0  ;;  %v231_v48 = vadd.f32 %v201_v44, %v171_v28  ;;  %v424_v62 = vadd.f32 %v1670_v53, %v1541_v16 }
  0x2e   :  { %v1075_v63 = vadd.f32 %v1049_v55, %v1573_v31  ;;  %v1076_v57 = vadd.f32 %v1050_v59, %v1557_v25  ;;  %v290_v2 = vadd.f32 %v260_v46, %v230_v42  ;;  %v425_v4 = vadd.f32 %v1672_v54, %v1543_v17 }
  0x2f   :  { %v821_v49 = vadd.f32 %v1605_v50, %v729_v58  ;;  %v822_v7 = vadd.f32 %v1589_v39, %v730_v43  ;;  %v291_v8 = vadd.f32 %v261_v56, %v231_v48  ;;  %v628_v9 = vrot.slane %v1666_v47, 1 }
  0x30   :  { %v1101_v22 = vadd.f32 %v1075_v63, %v1581_v36  ;;  %v1102_v26 = vadd.f32 %v1076_v57, %v1565_v29  ;;  %v320_v28 = vmax.f32 %v290_v2, 0.0  ;;  %v1737_v32 = vrot.slane %v1668_v52, 1 }
  0x31   :  { %v852_v37 = vadd.f32 %v821_v49, %v1661_v35  ;;  %v853_v40 = vadd.f32 %v822_v7, %v1650_v24  ;;  %v321_v44 = vmax.f32 %v291_v8, 0.0  ;;  %v763_v46 = vrot.slane %v1670_v53, 2 }
  0x32   :  { %v1127_v55 = vadd.f32 %v1101_v22, %v1586_v38  ;;  %v1128_v59 = vadd.f32 %v1102_v26, %v1575_v33  ;;  %v1744_v42 = vmul.f32 -9.0, %v320_v28  ;;  %v1746_v56 = vmul.f32 -10.0, %v320_v28 }
  0x33   :  { %v947_v58 = vadd.f32 %v1695_v6, %v852_v37  ;;  %v948_v43 = vadd.f32 %v1678_v60, %v853_v40  ;;  %v1750_v48 = vmul.f32 -9.0, %v321_v44  ;;  %v1752_v63 = vmul.f32 -10.0, %v321_v44 }
  0x34   :  { %v1153_v57 = vadd.f32 %v1127_v55, %v1605_v50  ;;  %v1154_v2 = vadd.f32 %v1128_v59, %v1589_v39  ;;  %v452_v49 = vadd.f32 %v424_v62, %v1746_v56  ;;  %v515_v7 = vrot.slane %v1746_v56, 1 }
  0x35   :  { %v973_v8 = vadd.f32 %v947_v58, %v1537_v10  ;;  %v974_v22 = vadd.f32 %v948_v43, %v1539_v11  ;;  %v453_v26 = vadd.f32 %v425_v4, %v1752_v63  ;;  %v1762_v28 = vrot.slane %v1752_v63, 1 }
  0x36   :  { %v1179_v37 = vadd.f32 %v1153_v57, %v1609_v51  ;;  %v1180_v40 = vadd.f32 %v1154_v2, %v1593_v41  ;;  %v572_v44 = vadd.f32 %v1581_v36, %v452_v49  ;;  %v1769_v62 = vsel %vm502_vm0, %v628_v9, %v1737_v32 }
  0x37   :  { %v999_v55 = vadd.f32 %v973_v8, %v1549_v20  ;;  %v1000_v59 = vadd.f32 %v974_v22, %v1551_v21  ;;  %v1775_v4 = vsel %vm502_vm0, %v515_v7, %v1762_v28  ;;  %v573_v58 = vadd.f32 %v1565_v29, %v453_v26 }
  0x38   :  { %v1205_v43 = vadd.f32 %v1179_v37, %v1533_v12  ;;  %v1206_v57 = vadd.f32 %v1180_v40, %v1535_v13  ;;  %v691_v2 = vadd.f32 %v1769_v62, %v572_v44  ;;  %v1782_v49 = vrot.slane %v1672_v54, 2 }
  0x39   :  { %v1025_v9 = vadd.f32 %v999_v55, %v1670_v53  ;;  %v1026_v8 = vadd.f32 %v1000_v59, %v1672_v54  ;;  %v692_v22 = vadd.f32 %v1737_v32, %v573_v58  ;;  %v886_v7 = vrot.slane %v1744_v42, 2 }
  0x3a   :  { %v1231_v52 = vadd.f32 %v1205_v43, %v1545_v18  ;;  %v1232_v26 = vadd.f32 %v1206_v57, %v1547_v19  ;;  %v731_v12 = vadd.f32 %v691_v2, %v1775_v4  ;;  %v1793_v13 = vsel %vm753_vm1, %v763_v46, %v1782_v49 }
  0x3b   :  { %v1051_v37 = vadd.f32 %v1025_v9, %v1642_v14  ;;  %v1052_v40 = vadd.f32 %v1026_v8, %v1632_v3  ;;  %v732_v44 = vadd.f32 %v692_v22, %v1762_v28  ;;  %v1799_v55 = vrot.slane %v1750_v48, 2 }
  0x3c   :  { %v1257_v59 = vadd.f32 %v1231_v52, %v1549_v20  ;;  %v1258_v18 = vadd.f32 %v1232_v26, %v1551_v21  ;;  %v823_v19 = vadd.f32 %v1661_v35, %v731_v12  ;;  %v82_v58 = vmul.f32 10.0, %v1657_v34 }
  0x3d   :  { %v1077_v46 = vadd.f32 %v1051_v37, %v1646_v15  ;;  %v1078_v43 = vadd.f32 %v1052_v40, %v1636_v5  ;;  %v824_v57 = vadd.f32 %v1650_v24, %v732_v44  ;;  %v1810_v2 = vsel %vm753_vm1, %v886_v7, %v1799_v55 }
  0x3e   :  { %v1283_v9 = vadd.f32 %v1257_v59, %v1569_v30  ;;  %v1284_v52 = vadd.f32 %v1258_v18, %v1553_v23  ;;  %v854_v8 = vadd.f32 %v823_v19, %v1793_v13  ;;  %v83_v22 = vmul.f32 10.0, %v1689_v1  ;;  %v1825_v23 = vld [vmem:[%s3162_s0 + $0x60] sm:$0xff] }
  0x3f   :  { %v1103_v34 = vadd.f32 %v1077_v46, %v1700_v61  ;;  %v1104_v26 = vadd.f32 %v1078_v43, %v1684_v0  ;;  %v855_v12 = vadd.f32 %v824_v57, %v1782_v49  ;;  %v112_v37 = vadd.f32 -2.0, %v82_v58 }
  0x40   :  { %v1309_v40 = vadd.f32 %v1283_v9, %v1573_v31  ;;  %v1310_v7 = vadd.f32 %v1284_v52, %v1557_v25  ;;  %v949_v44 = vadd.f32 %v1810_v2, %v854_v8  ;;  %v113_v30 = vadd.f32 -2.0, %v83_v22  ;;  %v1833_v31 = vld [vmem:[%s3162_s0 + $0x68] sm:$0x7f] }
  0x41   :  { %v1129_v1 = vadd.f32 %v1103_v34, %v1605_v50  ;;  %v1130_v59 = vadd.f32 %v1104_v26, %v1589_v39  ;;  %v950_v18 = vadd.f32 %v1799_v55, %v855_v12  ;;  %v142_v25 = vmul.f32 9.0, %v1825_v23 }
  0x42   :  { %v1335_v19 = vadd.f32 %v1309_v40, %v1581_v36  ;;  %v1336_v58 = vadd.f32 %v1310_v7, %v1565_v29  ;;  %v975_v46 = vadd.f32 %v949_v44, %v1541_v16  ;;  %v143_v43 = vmul.f32 9.0, %v1833_v31 }
  0x43   :  { %v1155_v57 = vadd.f32 %v1129_v1, %v1661_v35  ;;  %v1156_v9 = vadd.f32 %v1130_v59, %v1650_v24  ;;  %v976_v52 = vadd.f32 %v950_v18, %v1543_v17  ;;  %v172_v8 = vadd.f32 %v142_v25, %v112_v37 }
  0x44   :  { %v1361_v22 = vadd.f32 %v1335_v19, %v1586_v38  ;;  %v1362_v34 = vadd.f32 %v1336_v58, %v1575_v33  ;;  %v1001_v26 = vadd.f32 %v975_v46, %v1670_v53  ;;  %v173_v12 = vadd.f32 %v143_v43, %v113_v30  ;;  %v1863_v43 = vld [vmem:[%s3162_s0 + $0x61] sm:$0xff] }
  0x45   :  { %v1181_v40 = vadd.f32 %v1155_v57, %v1695_v6  ;;  %v1182_v7 = vadd.f32 %v1156_v9, %v1678_v60  ;;  %v1002_v44 = vadd.f32 %v976_v52, %v1672_v54  ;;  %v202_v1 = vmul.f32 9.0, %v1709_v27  ;;  %v3167_v52 = vld [vmem:[#allocation2_spill] sm:$0xff] }
  0x46   :  { %v1387_v59 = vadd.f32 %v1361_v22, %v1605_v50  ;;  %v1388_v18 = vadd.f32 %v1362_v34, %v1589_v39  ;;  %v1027_v37 = vadd.f32 %v1001_v26, %v1746_v56  ;;  %v203_v38 = vmul.f32 9.0, %v1716_v45 }
  0x47   :  { %v1207_v33 = vadd.f32 %v1181_v40, %v1537_v10  ;;  %v1208_v30 = vadd.f32 %v1182_v7, %v1539_v11  ;;  %v1028_v25 = vadd.f32 %v1002_v44, %v1752_v63  ;;  %v232_v19 = vadd.f32 %v202_v1, %v172_v8 }
  0x48   :  { %v1413_v58 = vadd.f32 %v1387_v59, %v1609_v51  ;;  %v1414_v46 = vadd.f32 %v1388_v18, %v1593_v41  ;;  %v1053_v27 = vadd.f32 %v1027_v37, %v1581_v36  ;;  %v233_v57 = vadd.f32 %v203_v38, %v173_v12  ;;  %v1871_v51 = vld [vmem:[%s3162_s0 + $0x69] sm:$0x7f] }
  0x49   :  { %v1233_v45 = vadd.f32 %v1207_v33, %v1549_v20  ;;  %v1234_v10 = vadd.f32 %v1208_v30, %v1551_v21  ;;  %v1054_v11 = vadd.f32 %v1028_v25, %v1565_v29  ;;  %v262_v41 = vmul.f32 10.0, %v1863_v43 }
  0x4a   :  { %1439 = vst [vmem:[%s3163_s1] sm:$0xff] %v1413_v58  ;;  %1440 = vst [vmem:[%s3163_s1 + $0x8] sm:$0x1f] %v1414_v46  ;;  %v1079_v20 = vadd.f32 %v1053_v27, %v1769_v62  ;;  %v263_v21 = vmul.f32 10.0, %v1871_v51  ;;  %v426_v9 = vadd.f32 %v1746_v56, %v1666_v47  ;;  %v427_v8 = vadd.f32 %v1752_v63, %v3167_v52 }
  0x4b   :  { %v1259_v22 = vadd.f32 %v1233_v45, %v1670_v53  ;;  %v1260_v34 = vadd.f32 %v1234_v10, %v1672_v54  ;;  %v1080_v26 = vadd.f32 %v1054_v11, %v1737_v32  ;;  %v292_v12 = vadd.f32 %v262_v41, %v232_v19 }
  0x4c   :  { %v1105_v40 = vadd.f32 %v1079_v20, %v1775_v4  ;;  %v293_v7 = vadd.f32 %v263_v21, %v233_v57  ;;  %v631_v44 = vrot.slane %v1744_v42, 1  ;;  %v1892_v1 = vrot.slane %v1750_v48, 1 }
  0x4d   :  { %v1285_v59 = vadd.f32 %v1259_v22, %v1642_v14  ;;  %v1286_v18 = vadd.f32 %v1260_v34, %v1632_v3  ;;  %v1106_v37 = vadd.f32 %v1080_v26, %v1762_v28  ;;  %v322_v38 = vmax.f32 %v292_v12, 0.0 }
  0x4e   :  { %v1131_v33 = vadd.f32 %v1105_v40, %v1661_v35  ;;  %v323_v30 = vmax.f32 %v293_v7, 0.0  ;;  %v1900_v25 = vsel %vm502_vm0, %v631_v44, %v1892_v1  ;;  %v766_v19 = vrot.slane %v1746_v56, 2 }
  0x4f   :  { %v1311_v58 = vadd.f32 %v1285_v59, %v1646_v15  ;;  %v1312_v46 = vadd.f32 %v1286_v18, %v1636_v5  ;;  %v1132_v14 = vadd.f32 %v1106_v37, %v1650_v24  ;;  %v1906_v27 = vmul.f32 -9.0, %v322_v38 }
  0x50   :  { %v1157_v3 = vadd.f32 %v1131_v33, %v1793_v13  ;;  %v1909_v57 = vmul.f32 -9.0, %v323_v30  ;;  %v1911_v45 = vmul.f32 -10.0, %v322_v38  ;;  %v1913_v10 = vmul.f32 -10.0, %v323_v30 }
  0x51   :  { %v1337_v11 = vadd.f32 %v1311_v58, %v1700_v61  ;;  %v1338_v41 = vadd.f32 %v1312_v46, %v1684_v0  ;;  %v1158_v15 = vadd.f32 %v1132_v14, %v1782_v49  ;;  %v1919_v5 = vrot.slane %v1752_v63, 2 }
  0x52   :  { %v1183_v20 = vadd.f32 %v1157_v3, %v1810_v2  ;;  %v454_v21 = vadd.f32 %v426_v9, %v1911_v45  ;;  %v455_v22 = vadd.f32 %v427_v8, %v1913_v10  ;;  %v518_v34 = vrot.slane %v1911_v45, 1 }
  0x53   :  { %v1363_v26 = vadd.f32 %v1337_v11, %v1605_v50  ;;  %v1364_v12 = vadd.f32 %v1338_v41, %v1589_v39  ;;  %v1184_v40 = vadd.f32 %v1158_v15, %v1799_v55  ;;  %v1929_v7 = vrot.slane %v1913_v10, 1  ;;  %v1961_v11 = vld [vmem:[%s3162_s0 + $0x70] sm:$0xff] }
  0x54   :  { %v1209_v44 = vadd.f32 %v1183_v20, %v1541_v16  ;;  %v574_v59 = vadd.f32 %v1700_v61, %v454_v21  ;;  %v575_v18 = vadd.f32 %v1684_v0, %v455_v22  ;;  %v1936_v9 = vsel %vm753_vm1, %v766_v19, %v1919_v5  ;;  %v1983_v22 = vld [vmem:[%s3162_s0 + $0x78] sm:$0x7f] }
  0x55   :  { %v1389_v8 = vadd.f32 %v1363_v26, %v1661_v35  ;;  %v1390_v50 = vadd.f32 %v1364_v12, %v1650_v24  ;;  %v1210_v39 = vadd.f32 %v1184_v40, %v1543_v17  ;;  %v1943_v37 = vsel %vm502_vm0, %v518_v34, %v1929_v7 }
  0x56   :  { %v1235_v16 = vadd.f32 %v1209_v44, %v1670_v53  ;;  %v693_v38 = vadd.f32 %v1900_v25, %v574_v59  ;;  %v694_v33 = vadd.f32 %v1892_v1, %v575_v18  ;;  %v889_v30 = vrot.slane %v1906_v27, 2  ;;  %v1994_v18 = vld [vmem:[%s3162_s0 + $0x71] sm:$0xff] }
  0x57   :  { %v1415_v19 = vadd.f32 %v1389_v8, %v1695_v6  ;;  %v1416_v58 = vadd.f32 %v1390_v50, %v1678_v60  ;;  %v1236_v46 = vadd.f32 %v1210_v39, %v1672_v54  ;;  %v1953_v17 = vrot.slane %v1909_v57, 2 }
  0x58   :  { %v1261_v14 = vadd.f32 %v1235_v16, %v1746_v56  ;;  %v733_v3 = vadd.f32 %v693_v38, %v1943_v37  ;;  %v734_v53 = vadd.f32 %v694_v33, %v1929_v7  ;;  %v84_v6 = vmul.f32 10.0, %v1825_v23  ;;  %v2005_v33 = vld [vmem:[%s3162_s0 + $0x79] sm:$0x7f] }
  0x59   :  { %1441 = vst [vmem:[%s3163_s1 + $0x10] sm:$0xff] %v1415_v19  ;;  %1442 = vst [vmem:[%s3163_s1 + $0x18] sm:$0x1f] %v1416_v58  ;;  %v1262_v54 = vadd.f32 %v1236_v46, %v1752_v63  ;;  %v1973_v60 = vsel %vm753_vm1, %v889_v30, %v1953_v17  ;;  %v85_v41 = vmul.f32 10.0, %v1833_v31  ;;  %v144_v15 = vmul.f32 9.0, %v1961_v11 }
  0x5a   :  { %v1287_v23 = vadd.f32 %v1261_v14, %v1581_v36  ;;  %v825_v20 = vadd.f32 %v1793_v13, %v733_v3  ;;  %v826_v21 = vadd.f32 %v1782_v49, %v734_v53  ;;  %v114_v34 = vadd.f32 -2.0, %v84_v6 }
  0x5b   :  { %v1288_v26 = vadd.f32 %v1262_v54, %v1565_v29  ;;  %v115_v12 = vadd.f32 -2.0, %v85_v41  ;;  %v145_v40 = vmul.f32 9.0, %v1983_v22  ;;  %v204_v31 = vmul.f32 9.0, %v1863_v43 }
  0x5c   :  { %v1313_v44 = vadd.f32 %v1287_v23, %v1769_v62  ;;  %v856_v36 = vadd.f32 %v825_v20, %v1936_v9  ;;  %v857_v59 = vadd.f32 %v826_v21, %v1919_v5  ;;  %v174_v8 = vadd.f32 %v144_v15, %v114_v34 }
  0x5d   :  { %v1314_v50 = vadd.f32 %v1288_v26, %v1737_v32  ;;  %v175_v29 = vadd.f32 %v145_v40, %v115_v12  ;;  %v205_v39 = vmul.f32 9.0, %v1871_v51  ;;  %v264_v16 = vmul.f32 10.0, %v1994_v18 }
  0x5e   :  { %v1339_v43 = vadd.f32 %v1313_v44, %v1775_v4  ;;  %v951_v62 = vadd.f32 %v1973_v60, %v856_v36  ;;  %v952_v38 = vadd.f32 %v1953_v17, %v857_v59  ;;  %v234_v30 = vadd.f32 %v204_v31, %v174_v8 }
  0x5f   :  { %v1340_v19 = vadd.f32 %v1314_v50, %v1762_v28  ;;  %v235_v32 = vadd.f32 %v205_v39, %v175_v29  ;;  %v265_v58 = vmul.f32 10.0, %v2005_v33  ;;  %v428_v51 = vadd.f32 %v1911_v45, %v1744_v42 }
  0x60   :  { %v1365_v46 = vadd.f32 %v1339_v43, %v1661_v35  ;;  %v977_v14 = vadd.f32 %v951_v62, %v1666_v47  ;;  %v978_v3 = vadd.f32 %v952_v38, %v3167_v52  ;;  %v294_v53 = vadd.f32 %v264_v16, %v234_v30 }
  0x61   :  { %v1366_v6 = vadd.f32 %v1340_v19, %v1650_v24  ;;  %v295_v54 = vadd.f32 %v265_v58, %v235_v32  ;;  %v429_v41 = vadd.f32 %v1913_v10, %v1750_v48  ;;  %v634_v15 = vrot.slane %v1906_v27, 1 }
  0x62   :  { %v1391_v23 = vadd.f32 %v1365_v46, %v1793_v13  ;;  %v1003_v20 = vadd.f32 %v977_v14, %v1746_v56  ;;  %v1004_v21 = vadd.f32 %v978_v3, %v1752_v63  ;;  %v324_v35 = vmax.f32 %v294_v53, 0.0 }
  0x63   :  { %v1392_v34 = vadd.f32 %v1366_v6, %v1782_v49  ;;  %v325_v26 = vmax.f32 %v295_v54, 0.0  ;;  %v2023_v12 = vrot.slane %v1909_v57, 1  ;;  %v769_v24 = vrot.slane %v1911_v45, 2 }
  0x64   :  { %v1417_v40 = vadd.f32 %v1391_v23, %v1810_v2  ;;  %v1029_v31 = vadd.f32 %v1003_v20, %v1911_v45  ;;  %v1030_v44 = vadd.f32 %v1004_v21, %v1913_v10  ;;  %v2029_v36 = vmul.f32 -9.0, %v324_v35 }
  0x65   :  { %v1418_v59 = vadd.f32 %v1392_v34, %v1799_v55  ;;  %v2032_v8 = vmul.f32 -9.0, %v325_v26  ;;  %v2034_v50 = vmul.f32 -10.0, %v324_v35  ;;  %v2036_v29 = vmul.f32 -10.0, %v325_v26 }
  0x66   :  { %1443 = vst [vmem:[%s3163_s1 + $0x20] sm:$0xff] %v1417_v40  ;;  %v1055_v2 = vadd.f32 %v1029_v31, %v1700_v61  ;;  %v1056_v39 = vadd.f32 %v1030_v44, %v1684_v0  ;;  %v2045_v16 = vsel %vm502_vm0, %v634_v15, %v2023_v12  ;;  %v2048_v55 = vrot.slane %v1913_v10, 2 }
  0x67   :  { %1444 = vst [vmem:[%s3163_s1 + $0x28] sm:$0x1f] %v1418_v59  ;;  %v456_v43 = vadd.f32 %v428_v51, %v2034_v50  ;;  %v457_v62 = vadd.f32 %v429_v41, %v2036_v29  ;;  %v521_v38 = vrot.slane %v2034_v50, 1  ;;  %v2057_v30 = vrot.slane %v2036_v29, 1  ;;  %v2080_v41 = vld [vmem:[%s3162_s0 + $0x80] sm:$0xff] }
  0x68   :  { %v1081_v19 = vadd.f32 %v1055_v2, %v1900_v25  ;;  %v1082_v32 = vadd.f32 %v1056_v39, %v1892_v1  ;;  %v2063_v58 = vsel %vm753_vm1, %v769_v24, %v2048_v55  ;;  %v892_v46 = vrot.slane %v2029_v36, 2 }
  0x69   :  { %v2068_v51 = vsel %vm502_vm0, %v521_v38, %v2057_v30  ;;  %v576_v14 = vadd.f32 %v1775_v4, %v456_v43  ;;  %v577_v3 = vadd.f32 %v1762_v28, %v457_v62  ;;  %v2073_v53 = vrot.slane %v2032_v8, 2  ;;  %v2107_v62 = vld [vmem:[%s3162_s0 + $0x81] sm:$0xff] }
  0x6a   :  { %v1107_v6 = vadd.f32 %v1081_v19, %v1943_v37  ;;  %v1108_v54 = vadd.f32 %v1082_v32, %v1929_v7  ;;  %v86_v15 = vmul.f32 10.0, %v1961_v11  ;;  %v87_v23 = vmul.f32 10.0, %v1983_v22  ;;  %v2096_v11 = vld [vmem:[%s3162_s0 + $0x88] sm:$0x7f] }
  0x6b   :  { %v695_v20 = vadd.f32 %v2045_v16, %v576_v14  ;;  %v696_v21 = vadd.f32 %v2023_v12, %v577_v3  ;;  %v2088_v35 = vsel %vm753_vm1, %v892_v46, %v2073_v53  ;;  %v146_v34 = vmul.f32 9.0, %v2080_v41 }
  0x6c   :  { %v1133_v26 = vadd.f32 %v1107_v6, %v1793_v13  ;;  %v1134_v24 = vadd.f32 %v1108_v54, %v1782_v49  ;;  %v116_v22 = vadd.f32 -2.0, %v86_v15  ;;  %v117_v40 = vadd.f32 -2.0, %v87_v23 }
  0x6d   :  { %v735_v31 = vadd.f32 %v695_v20, %v2068_v51  ;;  %v736_v44 = vadd.f32 %v696_v21, %v2057_v30  ;;  %v147_v59 = vmul.f32 9.0, %v2096_v11  ;;  %v206_v2 = vmul.f32 9.0, %v1994_v18  ;;  %v2115_v18 = vld [vmem:[%s3162_s0 + $0x89] sm:$0x7f] }
  0x6e   :  { %v1159_v39 = vadd.f32 %v1133_v26, %v1936_v9  ;;  %v1160_v43 = vadd.f32 %v1134_v24, %v1919_v5  ;;  %v176_v38 = vadd.f32 %v146_v34, %v116_v22  ;;  %v207_v19 = vmul.f32 9.0, %v2005_v33 }
  0x6f   :  { %v827_v32 = vadd.f32 %v1936_v9, %v735_v31  ;;  %v828_v46 = vadd.f32 %v1919_v5, %v736_v44  ;;  %v177_v14 = vadd.f32 %v147_v59, %v117_v40  ;;  %v266_v3 = vmul.f32 10.0, %v2107_v62 }
  0x70   :  { %v1185_v6 = vadd.f32 %v1159_v39, %v1973_v60  ;;  %v1186_v54 = vadd.f32 %v1160_v43, %v1953_v17  ;;  %v236_v15 = vadd.f32 %v206_v2, %v176_v38  ;;  %v267_v23 = vmul.f32 10.0, %v2115_v18 }
  0x71   :  { %v858_v33 = vadd.f32 %v827_v32, %v2063_v58  ;;  %v859_v20 = vadd.f32 %v828_v46, %v2048_v55  ;;  %v237_v21 = vadd.f32 %v207_v19, %v177_v14  ;;  %v430_v34 = vadd.f32 %v2034_v50, %v1906_v27 }
  0x72   :  { %v1211_v26 = vadd.f32 %v1185_v6, %v1666_v47  ;;  %v1212_v24 = vadd.f32 %v1186_v54, %v3167_v52  ;;  %v296_v22 = vadd.f32 %v266_v3, %v236_v15  ;;  %v431_v40 = vadd.f32 %v2036_v29, %v1909_v57 }
  0x73   :  { %v953_v31 = vadd.f32 %v2088_v35, %v858_v33  ;;  %v954_v44 = vadd.f32 %v2073_v53, %v859_v20  ;;  %v297_v59 = vadd.f32 %v267_v23, %v237_v21  ;;  %v637_v2 = vrot.slane %v2029_v36, 1 }
  0x74   :  { %v1237_v39 = vadd.f32 %v1211_v26, %v1746_v56  ;;  %v1238_v43 = vadd.f32 %v1212_v24, %v1752_v63  ;;  %v326_v38 = vmax.f32 %v296_v22, 0.0  ;;  %v2135_v47 = vrot.slane %v2032_v8, 1 }
  0x75   :  { %v979_v52 = vadd.f32 %v953_v31, %v1744_v42  ;;  %v980_v19 = vadd.f32 %v954_v44, %v1750_v48  ;;  %v327_v32 = vmax.f32 %v297_v59, 0.0  ;;  %v772_v46 = vrot.slane %v2034_v50, 2 }
  0x76   :  { %v1263_v14 = vadd.f32 %v1237_v39, %v1911_v45  ;;  %v1264_v3 = vadd.f32 %v1238_v43, %v1913_v10  ;;  %v2142_v6 = vmul.f32 -9.0, %v326_v38  ;;  %v2144_v56 = vmul.f32 -10.0, %v326_v38 }
  0x77   :  { %v1005_v63 = vadd.f32 %v979_v52, %v1911_v45  ;;  %v1006_v54 = vadd.f32 %v980_v19, %v1913_v10  ;;  %v2148_v15 = vmul.f32 -9.0, %v327_v32  ;;  %v2150_v23 = vmul.f32 -10.0, %v327_v32 }
  0x78   :  { %v1289_v33 = vadd.f32 %v1263_v14, %v1700_v61  ;;  %v1290_v20 = vadd.f32 %v1264_v3, %v1684_v0  ;;  %v458_v21 = vadd.f32 %v430_v34, %v2144_v56  ;;  %v524_v26 = vrot.slane %v2144_v56, 1 }
  0x79   :  { %v1031_v24 = vadd.f32 %v1005_v63, %v2034_v50  ;;  %v1032_v22 = vadd.f32 %v1006_v54, %v2036_v29  ;;  %v459_v31 = vadd.f32 %v431_v40, %v2150_v23  ;;  %v2160_v44 = vrot.slane %v2150_v23, 1 }
  0x7a   :  { %v1315_v59 = vadd.f32 %v1289_v33, %v1900_v25  ;;  %v1316_v39 = vadd.f32 %v1290_v20, %v1892_v1  ;;  %v578_v61 = vadd.f32 %v1943_v37, %v458_v21  ;;  %v2167_v0 = vsel %vm502_vm0, %v637_v2, %v2135_v47 }
  0x7b   :  { %v1057_v34 = vadd.f32 %v1031_v24, %v1775_v4  ;;  %v1058_v43 = vadd.f32 %v1032_v22, %v1762_v28  ;;  %v2173_v40 = vsel %vm502_vm0, %v524_v26, %v2160_v44  ;;  %v579_v38 = vadd.f32 %v1929_v7, %v459_v31 }
  0x7c   :  { %v1341_v25 = vadd.f32 %v1315_v59, %v1943_v37  ;;  %v1342_v1 = vadd.f32 %v1316_v39, %v1929_v7  ;;  %v697_v52 = vadd.f32 %v2167_v0, %v578_v61  ;;  %v2180_v19 = vrot.slane %v2036_v29, 2 }
  0x7d   :  { %v1083_v2 = vadd.f32 %v1057_v34, %v2045_v16  ;;  %v1084_v32 = vadd.f32 %v1058_v43, %v2023_v12  ;;  %v698_v14 = vadd.f32 %v2135_v47, %v579_v38  ;;  %v895_v3 = vrot.slane %v2142_v6, 2 }
  0x7e   :  { %v1367_v63 = vadd.f32 %v1341_v25, %v1793_v13  ;;  %v1368_v54 = vadd.f32 %v1342_v1, %v1782_v49  ;;  %v737_v33 = vadd.f32 %v697_v52, %v2173_v40  ;;  %v2191_v20 = vsel %vm753_vm1, %v772_v46, %v2180_v19 }
  0x7f   :  { %v1109_v21 = vadd.f32 %v1083_v2, %v2068_v51  ;;  %v1110_v26 = vadd.f32 %v1084_v32, %v2057_v30  ;;  %v738_v24 = vadd.f32 %v698_v14, %v2160_v44  ;;  %v2197_v22 = vrot.slane %v2148_v15, 2  ;;  %v2220_v32 = vld [vmem:[%s3162_s0 + $0x90] sm:$0xff] }
  0x80   :  { %v1393_v31 = vadd.f32 %v1367_v63, %v1936_v9  ;;  %v1394_v13 = vadd.f32 %v1368_v54, %v1919_v5  ;;  %v829_v49 = vadd.f32 %v2063_v58, %v737_v33  ;;  %v88_v59 = vmul.f32 10.0, %v2080_v41 }
  0x81   :  { %v1135_v46 = vadd.f32 %v1109_v21, %v1936_v9  ;;  %v1136_v39 = vadd.f32 %v1110_v26, %v1919_v5  ;;  %v830_v61 = vadd.f32 %v2048_v55, %v738_v24  ;;  %v2208_v34 = vsel %vm753_vm1, %v895_v3, %v2197_v22 }
  0x82   :  { %v1419_v43 = vadd.f32 %v1393_v31, %v1973_v60  ;;  %v1420_v38 = vadd.f32 %v1394_v13, %v1953_v17  ;;  %v860_v25 = vadd.f32 %v829_v49, %v2191_v20  ;;  %v89_v1 = vmul.f32 10.0, %v2096_v11  ;;  %v2225_v60 = vld [vmem:[%s3162_s0 + $0x98] sm:$0x7f] }
  0x83   :  { %v1161_v41 = vadd.f32 %v1135_v46, %v2063_v58  ;;  %v1162_v52 = vadd.f32 %v1136_v39, %v2048_v55  ;;  %v861_v2 = vadd.f32 %v830_v61, %v2180_v19  ;;  %v118_v17 = vadd.f32 -2.0, %v88_v59  ;;  %v2244_v31 = vld [vmem:[%s3162_s0 + $0x91] sm:$0xff] }
  0x84   :  { %1445 = vst [vmem:[%s3163_s1 + $0x30] sm:$0xff] %v1419_v43  ;;  %1446 = vst [vmem:[%s3163_s1 + $0x38] sm:$0x1f] %v1420_v38  ;;  %v955_v11 = vadd.f32 %v2208_v34, %v860_v25  ;;  %v119_v14 = vadd.f32 -2.0, %v89_v1  ;;  %v148_v3 = vmul.f32 9.0, %v2220_v32  ;;  %v149_v63 = vmul.f32 9.0, %v2225_v60 }
  0x85   :  { %v1187_v54 = vadd.f32 %v1161_v41, %v2088_v35  ;;  %v1188_v33 = vadd.f32 %v1162_v52, %v2073_v53  ;;  %v956_v21 = vadd.f32 %v2197_v22, %v861_v2  ;;  %v208_v26 = vmul.f32 9.0, %v2107_v62  ;;  %v2253_v62 = vld [vmem:[%s3162_s0 + $0x99] sm:$0x7f] }
  0x86   :  { %v981_v24 = vadd.f32 %v955_v11, %v1906_v27  ;;  %v178_v13 = vadd.f32 %v148_v3, %v118_v17  ;;  %v179_v49 = vadd.f32 %v149_v63, %v119_v14  ;;  %v209_v59 = vmul.f32 9.0, %v2115_v18 }
  0x87   :  { %v1213_v46 = vadd.f32 %v1187_v54, %v1744_v42  ;;  %v1214_v39 = vadd.f32 %v1188_v33, %v1750_v48  ;;  %v982_v61 = vadd.f32 %v956_v21, %v1909_v57  ;;  %v268_v43 = vmul.f32 10.0, %v2244_v31 }
  0x88   :  { %v1007_v38 = vadd.f32 %v981_v24, %v2034_v50  ;;  %v238_v25 = vadd.f32 %v208_v26, %v178_v13  ;;  %v239_v1 = vadd.f32 %v209_v59, %v179_v49  ;;  %v269_v41 = vmul.f32 10.0, %v2253_v62 }
  0x89   :  { %v1239_v18 = vadd.f32 %v1213_v46, %v1911_v45  ;;  %v1240_v42 = vadd.f32 %v1214_v39, %v1913_v10  ;;  %v1008_v48 = vadd.f32 %v982_v61, %v2036_v29  ;;  %v432_v52 = vadd.f32 %v2144_v56, %v2029_v36 }
  0x8a   :  { %v1033_v2 = vadd.f32 %v1007_v38, %v2144_v56  ;;  %v298_v17 = vadd.f32 %v268_v43, %v238_v25  ;;  %v299_v11 = vadd.f32 %v269_v41, %v239_v1  ;;  %v433_v14 = vadd.f32 %v2150_v23, %v2032_v8 }
  0x8b   :  { %v1265_v3 = vadd.f32 %v1239_v18, %v2034_v50  ;;  %v1266_v63 = vadd.f32 %v1240_v42, %v2036_v29  ;;  %v1034_v45 = vadd.f32 %v1008_v48, %v2150_v23  ;;  %v640_v10 = vrot.slane %v2142_v6, 1 }
  0x8c   :  { %v1059_v54 = vadd.f32 %v1033_v2, %v1943_v37  ;;  %v328_v33 = vmax.f32 %v298_v17, 0.0  ;;  %v329_v21 = vmax.f32 %v299_v11, 0.0  ;;  %v2272_v26 = vrot.slane %v2148_v15, 1 }
  0x8d   :  { %v1291_v24 = vadd.f32 %v1265_v3, %v1775_v4  ;;  %v1292_v13 = vadd.f32 %v1266_v63, %v1762_v28  ;;  %v1060_v49 = vadd.f32 %v1034_v45, %v1929_v7  ;;  %v775_v59 = vrot.slane %v2144_v56, 2 }
  0x8e   :  { %v1085_v46 = vadd.f32 %v1059_v54, %v2167_v0  ;;  %v2279_v39 = vmul.f32 -9.0, %v328_v33  ;;  %v2281_v61 = vmul.f32 -9.0, %v329_v21  ;;  %v2283_v43 = vmul.f32 -10.0, %v328_v33 }
  0x8f   :  { %v1317_v38 = vadd.f32 %v1291_v24, %v2045_v16  ;;  %v1318_v25 = vadd.f32 %v1292_v13, %v2023_v12  ;;  %v1086_v4 = vadd.f32 %v1060_v49, %v2135_v47  ;;  %v2288_v1 = vmul.f32 -10.0, %v329_v21 }
  0x90   :  { %v1111_v28 = vadd.f32 %v1085_v46, %v2173_v40  ;;  %v460_v41 = vadd.f32 %v432_v52, %v2283_v43  ;;  %v527_v18 = vrot.slane %v2283_v43, 1  ;;  %v2295_v42 = vsel %vm502_vm0, %v640_v10, %v2272_v26 }
  0x91   :  { %v1343_v48 = vadd.f32 %v1317_v38, %v2068_v51  ;;  %v1344_v16 = vadd.f32 %v1318_v25, %v2057_v30  ;;  %v1112_v12 = vadd.f32 %v1086_v4, %v2160_v44  ;;  %v461_v2 = vadd.f32 %v433_v14, %v2288_v1 }
  0x92   :  { %v1137_v17 = vadd.f32 %v1111_v28, %v2063_v58  ;;  %v2303_v11 = vrot.slane %v2288_v1, 1  ;;  %v580_v52 = vadd.f32 %v2068_v51, %v460_v41  ;;  %v2307_v3 = vrot.slane %v2150_v23, 2 }
  0x93   :  { %v1369_v63 = vadd.f32 %v1343_v48, %v1936_v9  ;;  %v1370_v45 = vadd.f32 %v1344_v16, %v1919_v5  ;;  %v1138_v10 = vadd.f32 %v1112_v12, %v2048_v55  ;;  %v581_v54 = vadd.f32 %v2057_v30, %v461_v2  ;;  %v2346_v2 = vld [vmem:[%s3162_s0 + $0xa0] sm:$0xff] }
  0x94   :  { %v1163_v14 = vadd.f32 %v1137_v17, %v2191_v20  ;;  %v2316_v33 = vsel %vm502_vm0, %v527_v18, %v2303_v11  ;;  %v699_v21 = vadd.f32 %v2295_v42, %v580_v52  ;;  %v2321_v24 = vsel %vm753_vm1, %v775_v59, %v2307_v3  ;;  %v2360_v17 = vld [vmem:[%s3162_s0 + $0xa8] sm:$0x7f] }
  0x95   :  { %v1395_v9 = vadd.f32 %v1369_v63, %v2063_v58  ;;  %v1396_v5 = vadd.f32 %v1370_v45, %v2048_v55  ;;  %v1164_v13 = vadd.f32 %v1138_v10, %v2180_v19  ;;  %v700_v49 = vadd.f32 %v2272_v26, %v581_v54 }
  0x96   :  { %v1189_v46 = vadd.f32 %v1163_v14, %v2208_v34  ;;  %v739_v38 = vadd.f32 %v699_v21, %v2316_v33  ;;  %v898_v25 = vrot.slane %v2279_v39, 2  ;;  %v2331_v4 = vrot.slane %v2281_v61, 2 }
  0x97   :  { %v1421_v59 = vadd.f32 %v1395_v9, %v2088_v35  ;;  %v1422_v28 = vadd.f32 %v1396_v5, %v2073_v53  ;;  %v1190_v41 = vadd.f32 %v1164_v13, %v2197_v22  ;;  %v740_v18 = vadd.f32 %v700_v49, %v2303_v11 }
  0x98   :  { %v1215_v48 = vadd.f32 %v1189_v46, %v1906_v27  ;;  %v831_v16 = vadd.f32 %v2191_v20, %v739_v38  ;;  %v2341_v12 = vsel %vm753_vm1, %v898_v25, %v2331_v4  ;;  %v90_v35 = vmul.f32 10.0, %v2220_v32 }
  0x99   :  { %1447 = vst [vmem:[%s3163_s1 + $0x40] sm:$0xff] %v1421_v59  ;;  %1448 = vst [vmem:[%s3163_s1 + $0x48] sm:$0x1f] %v1422_v28  ;;  %v1216_v27 = vadd.f32 %v1190_v41, %v1909_v57  ;;  %v832_v53 = vadd.f32 %v2180_v19, %v740_v18  ;;  %v91_v52 = vmul.f32 10.0, %v2225_v60  ;;  %v150_v32 = vmul.f32 9.0, %v2346_v2 }
  0x9a   :  { %v1241_v63 = vadd.f32 %v1215_v48, %v2034_v50  ;;  %v862_v45 = vadd.f32 %v831_v16, %v2321_v24  ;;  %v120_v10 = vadd.f32 -2.0, %v90_v35  ;;  %v151_v54 = vmul.f32 9.0, %v2360_v17  ;;  %v2375_v50 = vld [vmem:[%s3162_s0 + $0xa1] sm:$0xff] }
  0x9b   :  { %v1242_v57 = vadd.f32 %v1216_v27, %v2036_v29  ;;  %v863_v14 = vadd.f32 %v832_v53, %v2307_v3  ;;  %v121_v21 = vadd.f32 -2.0, %v91_v52  ;;  %v210_v9 = vmul.f32 9.0, %v2244_v31  ;;  %v2383_v31 = vld [vmem:[%s3162_s0 + $0xa9] sm:$0x7f] }
  0x9c   :  { %v1267_v5 = vadd.f32 %v1241_v63, %v2144_v56  ;;  %v957_v60 = vadd.f32 %v2341_v12, %v862_v45  ;;  %v180_v13 = vadd.f32 %v150_v32, %v120_v10  ;;  %v211_v49 = vmul.f32 9.0, %v2253_v62 }
  0x9d   :  { %v1268_v46 = vadd.f32 %v1242_v57, %v2150_v23  ;;  %v958_v29 = vadd.f32 %v2331_v4, %v863_v14  ;;  %v181_v38 = vadd.f32 %v151_v54, %v121_v21  ;;  %v270_v25 = vmul.f32 10.0, %v2375_v50 }
  0x9e   :  { %v1293_v59 = vadd.f32 %v1267_v5, %v1943_v37  ;;  %v983_v28 = vadd.f32 %v957_v60, %v2029_v36  ;;  %v240_v41 = vadd.f32 %v210_v9, %v180_v13  ;;  %v271_v18 = vmul.f32 10.0, %v2383_v31 }
  0x9f   :  { %v1294_v62 = vadd.f32 %v1268_v46, %v1929_v7  ;;  %v984_v48 = vadd.f32 %v958_v29, %v2032_v8  ;;  %v241_v16 = vadd.f32 %v211_v49, %v181_v38  ;;  %v434_v35 = vadd.f32 %v2283_v43, %v2142_v6 }
  0xa0   :  { %v1319_v27 = vadd.f32 %v1293_v59, %v2167_v0  ;;  %v1009_v53 = vadd.f32 %v983_v28, %v2144_v56  ;;  %v300_v52 = vadd.f32 %v270_v25, %v240_v41  ;;  %v435_v37 = vadd.f32 %v2288_v1, %v2148_v15 }
  0xa1   :  { %v1320_v32 = vadd.f32 %v1294_v62, %v2135_v47  ;;  %v1010_v63 = vadd.f32 %v984_v48, %v2150_v23  ;;  %v301_v45 = vadd.f32 %v271_v18, %v241_v16  ;;  %v643_v7 = vrot.slane %v2279_v39, 1 }
  0xa2   :  { %v1345_v10 = vadd.f32 %v1319_v27, %v2173_v40  ;;  %v1035_v54 = vadd.f32 %v1009_v53, %v2283_v43  ;;  %v330_v57 = vmax.f32 %v300_v52, 0.0  ;;  %v2403_v0 = vrot.slane %v2281_v61, 1 }
  0xa3   :  { %v1346_v14 = vadd.f32 %v1320_v32, %v2160_v44  ;;  %v1036_v21 = vadd.f32 %v1010_v63, %v2288_v1  ;;  %v331_v9 = vmax.f32 %v301_v45, 0.0  ;;  %v778_v47 = vrot.slane %v2283_v43, 2 }
  0xa4   :  { %v1371_v5 = vadd.f32 %v1345_v10, %v2063_v58  ;;  %v1061_v60 = vadd.f32 %v1035_v54, %v2068_v51  ;;  %v2410_v13 = vmul.f32 -9.0, %v330_v57  ;;  %v2412_v49 = vmul.f32 -10.0, %v330_v57 }
  0xa5   :  { %v1372_v46 = vadd.f32 %v1346_v14, %v2048_v55  ;;  %v1062_v29 = vadd.f32 %v1036_v21, %v2057_v30  ;;  %v2416_v38 = vmul.f32 -9.0, %v331_v9  ;;  %v2418_v25 = vmul.f32 -10.0, %v331_v9 }
  0xa6   :  { %v1397_v59 = vadd.f32 %v1371_v5, %v2191_v20  ;;  %v1087_v28 = vadd.f32 %v1061_v60, %v2295_v42  ;;  %v462_v58 = vadd.f32 %v434_v35, %v2412_v49  ;;  %v530_v41 = vrot.slane %v2412_v49, 1 }
  0xa7   :  { %v1398_v18 = vadd.f32 %v1372_v46, %v2180_v19  ;;  %v1088_v62 = vadd.f32 %v1062_v29, %v2272_v26  ;;  %v463_v55 = vadd.f32 %v435_v37, %v2418_v25  ;;  %v2428_v48 = vrot.slane %v2418_v25, 1 }
  0xa8   :  { %v1423_v16 = vadd.f32 %v1397_v59, %v2208_v34  ;;  %v1113_v27 = vadd.f32 %v1087_v28, %v2316_v33  ;;  %v582_v53 = vadd.f32 %v2173_v40, %v462_v58  ;;  %v2435_v35 = vsel %vm502_vm0, %v643_v7, %v2403_v0 }
  0xa9   :  { %v1424_v52 = vadd.f32 %v1398_v18, %v2197_v22  ;;  %v1114_v32 = vadd.f32 %v1088_v62, %v2303_v11  ;;  %v2441_v37 = vsel %vm502_vm0, %v530_v41, %v2428_v48  ;;  %v583_v63 = vadd.f32 %v2160_v44, %v463_v55 }
  0xaa   :  { %1449 = vst [vmem:[%s3163_s1 + $0x50] sm:$0xff] %v1423_v16  ;;  %v1139_v34 = vadd.f32 %v1113_v27, %v2191_v20  ;;  %v701_v45 = vadd.f32 %v2435_v35, %v582_v53  ;;  %v2450_v7 = vrot.slane %v2288_v1, 2  ;;  %v901_v22 = vrot.slane %v2410_v13, 2 }
  0xab   :  { %1450 = vst [vmem:[%s3163_s1 + $0x58] sm:$0x1f] %v1424_v52  ;;  %v1140_v10 = vadd.f32 %v1114_v32, %v2180_v19  ;;  %v702_v54 = vadd.f32 %v2403_v0, %v583_v63  ;;  %v2459_v57 = vrot.slane %v2416_v38, 2  ;;  %v92_v14 = vmul.f32 10.0, %v2346_v2  ;;  %v2478_v2 = vld [vmem:[%s3162_s0 + $0xb0] sm:$0xff] }
  0xac   :  { %v1165_v21 = vadd.f32 %v1139_v34, %v2321_v24  ;;  %v741_v9 = vadd.f32 %v701_v45, %v2441_v37  ;;  %v2466_v5 = vsel %vm753_vm1, %v778_v47, %v2450_v7  ;;  %v93_v60 = vmul.f32 10.0, %v2360_v17  ;;  %v2485_v17 = vld [vmem:[%s3162_s0 + $0xb8] sm:$0x7f] }
  0xad   :  { %v1166_v46 = vadd.f32 %v1140_v10, %v2307_v3  ;;  %v742_v29 = vadd.f32 %v702_v54, %v2428_v48  ;;  %v2473_v59 = vsel %vm753_vm1, %v901_v22, %v2459_v57  ;;  %v122_v28 = vadd.f32 -2.0, %v92_v14  ;;  %v2497_v32 = vld [vmem:[%s3162_s0 + $0xb1] sm:$0xff] }
  0xae   :  { %v1191_v58 = vadd.f32 %v1165_v21, %v2341_v12  ;;  %v833_v47 = vadd.f32 %v2321_v24, %v741_v9  ;;  %v123_v41 = vadd.f32 -2.0, %v93_v60  ;;  %v152_v18 = vmul.f32 9.0, %v2478_v2 }
  0xaf   :  { %v1192_v62 = vadd.f32 %v1166_v46, %v2331_v4  ;;  %v834_v55 = vadd.f32 %v2307_v3, %v742_v29  ;;  %v153_v16 = vmul.f32 9.0, %v2485_v17  ;;  %v212_v27 = vmul.f32 9.0, %v2375_v50  ;;  %v2505_v50 = vld [vmem:[%s3162_s0 + $0xb9] sm:$0x7f] }
  0xb0   :  { %v1217_v53 = vadd.f32 %v1191_v58, %v2029_v36  ;;  %v864_v52 = vadd.f32 %v833_v47, %v2466_v5  ;;  %v182_v63 = vadd.f32 %v152_v18, %v122_v28  ;;  %v213_v34 = vmul.f32 9.0, %v2383_v31 }
  0xb1   :  { %v1218_v45 = vadd.f32 %v1192_v62, %v2032_v8  ;;  %v865_v22 = vadd.f32 %v834_v55, %v2450_v7  ;;  %v183_v36 = vadd.f32 %v153_v16, %v123_v41  ;;  %v272_v10 = vmul.f32 10.0, %v2497_v32 }
  0xb2   :  { %v1243_v54 = vadd.f32 %v1217_v53, %v2144_v56  ;;  %v959_v14 = vadd.f32 %v2473_v59, %v864_v52  ;;  %v242_v21 = vadd.f32 %v212_v27, %v182_v63  ;;  %v273_v9 = vmul.f32 10.0, %v2505_v50 }
  0xb3   :  { %v1244_v31 = vadd.f32 %v1218_v45, %v2150_v23  ;;  %v960_v8 = vadd.f32 %v2459_v57, %v865_v22  ;;  %v243_v60 = vadd.f32 %v213_v34, %v183_v36  ;;  %v436_v46 = vadd.f32 %v2412_v49, %v2279_v39 }
  0xb4   :  { %v1269_v29 = vadd.f32 %v1243_v54, %v2283_v43  ;;  %v985_v28 = vadd.f32 %v959_v14, %v2142_v6  ;;  %v302_v58 = vadd.f32 %v272_v10, %v242_v21  ;;  %v437_v56 = vadd.f32 %v2418_v25, %v2281_v61 }
  0xb5   :  { %v1270_v47 = vadd.f32 %v1244_v31, %v2288_v1  ;;  %v986_v41 = vadd.f32 %v960_v8, %v2148_v15  ;;  %v303_v18 = vadd.f32 %v273_v9, %v243_v60  ;;  %v646_v23 = vrot.slane %v2410_v13, 1 }
  0xb6   :  { %v1295_v62 = vadd.f32 %v1269_v29, %v2068_v51  ;;  %v1011_v55 = vadd.f32 %v985_v28, %v2283_v43  ;;  %v332_v16 = vmax.f32 %v302_v58, 0.0  ;;  %v2525_v27 = vrot.slane %v2416_v38, 1 }
  0xb7   :  { %v1296_v53 = vadd.f32 %v1270_v47, %v2057_v30  ;;  %v1012_v52 = vadd.f32 %v986_v41, %v2288_v1  ;;  %v333_v63 = vmax.f32 %v303_v18, 0.0  ;;  %v781_v34 = vrot.slane %v2412_v49, 2 }
  0xb8   :  { %v1321_v45 = vadd.f32 %v1295_v62, %v2295_v42  ;;  %v1037_v22 = vadd.f32 %v1011_v55, %v2412_v49  ;;  %v2532_v36 = vmul.f32 -9.0, %v332_v16  ;;  %v2534_v51 = vmul.f32 -10.0, %v332_v16 }
  0xb9   :  { %v1322_v10 = vadd.f32 %v1296_v53, %v2272_v26  ;;  %v1038_v54 = vadd.f32 %v1012_v52, %v2418_v25  ;;  %v2538_v14 = vmul.f32 -9.0, %v333_v63  ;;  %v2540_v30 = vmul.f32 -10.0, %v333_v63 }
  0xba   :  { %v1347_v21 = vadd.f32 %v1321_v45, %v2316_v33  ;;  %v1063_v9 = vadd.f32 %v1037_v22, %v2173_v40  ;;  %v464_v42 = vadd.f32 %v436_v46, %v2534_v51  ;;  %v533_v31 = vrot.slane %v2534_v51, 1 }
  0xbb   :  { %v1348_v8 = vadd.f32 %v1322_v10, %v2303_v11  ;;  %v1064_v60 = vadd.f32 %v1038_v54, %v2160_v44  ;;  %v465_v26 = vadd.f32 %v437_v56, %v2540_v30  ;;  %v2550_v29 = vrot.slane %v2540_v30, 1 }
  0xbc   :  { %v1373_v28 = vadd.f32 %v1347_v21, %v2191_v20  ;;  %v1089_v58 = vadd.f32 %v1063_v9, %v2435_v35  ;;  %v584_v47 = vadd.f32 %v2316_v33, %v464_v42  ;;  %v2557_v46 = vsel %vm502_vm0, %v646_v23, %v2525_v27 }
  0xbd   :  { %v1374_v41 = vadd.f32 %v1348_v8, %v2180_v19  ;;  %v1090_v18 = vadd.f32 %v1064_v60, %v2403_v0  ;;  %v2563_v56 = vsel %vm502_vm0, %v533_v31, %v2550_v29  ;;  %v585_v62 = vadd.f32 %v2303_v11, %v465_v26 }
  0xbe   :  { %v1399_v20 = vadd.f32 %v1373_v28, %v2321_v24  ;;  %v1115_v55 = vadd.f32 %v1089_v58, %v2441_v37  ;;  %v703_v16 = vadd.f32 %v2557_v46, %v584_v47  ;;  %v2570_v53 = vrot.slane %v2418_v25, 2 }
  0xbf   :  { %v1400_v23 = vadd.f32 %v1374_v41, %v2307_v3  ;;  %v1116_v19 = vadd.f32 %v1090_v18, %v2428_v48  ;;  %v704_v52 = vadd.f32 %v2525_v27, %v585_v62  ;;  %v904_v63 = vrot.slane %v2532_v36, 2 }
  0xc0   :  { %v1425_v45 = vadd.f32 %v1399_v20, %v2341_v12  ;;  %v1141_v22 = vadd.f32 %v1115_v55, %v2321_v24  ;;  %v743_v10 = vadd.f32 %v703_v16, %v2563_v56  ;;  %v2581_v54 = vsel %vm753_vm1, %v781_v34, %v2570_v53  ;;  %v2597_v34 = vld [vmem:[%s3162_s0 + $0xc0] sm:$0xff] }
  0xc1   :  { %v1426_v21 = vadd.f32 %v1400_v23, %v2331_v4  ;;  %v1142_v9 = vadd.f32 %v1116_v19, %v2307_v3  ;;  %v744_v42 = vadd.f32 %v704_v52, %v2550_v29  ;;  %v2587_v31 = vrot.slane %v2538_v14, 2 }
  0xc2   :  { %1451 = vst [vmem:[%s3163_s1 + $0x60] sm:$0xff] %v1425_v45  ;;  %v1167_v12 = vadd.f32 %v1141_v22, %v2466_v5  ;;  %v835_v8 = vadd.f32 %v2466_v5, %v743_v10  ;;  %v94_v4 = vmul.f32 10.0, %v2478_v2  ;;  %v95_v60 = vmul.f32 10.0, %v2485_v17  ;;  %v2616_v17 = vld [vmem:[%s3162_s0 + $0xc8] sm:$0x7f] }
  0xc3   :  { %1452 = vst [vmem:[%s3163_s1 + $0x68] sm:$0x1f] %v1426_v21  ;;  %v1168_v26 = vadd.f32 %v1142_v9, %v2450_v7  ;;  %v836_v28 = vadd.f32 %v2450_v7, %v744_v42  ;;  %v2608_v58 = vsel %vm753_vm1, %v904_v63, %v2587_v31  ;;  %v154_v47 = vmul.f32 9.0, %v2597_v34  ;;  %v2627_v63 = vld [vmem:[%s3162_s0 + $0xc1] sm:$0xff] }
  0xc4   :  { %v1193_v41 = vadd.f32 %v1167_v12, %v2473_v59  ;;  %v866_v2 = vadd.f32 %v835_v8, %v2581_v54  ;;  %v124_v18 = vadd.f32 -2.0, %v94_v4  ;;  %v125_v62 = vadd.f32 -2.0, %v95_v60 }
  0xc5   :  { %v1194_v20 = vadd.f32 %v1168_v26, %v2459_v57  ;;  %v867_v55 = vadd.f32 %v836_v28, %v2570_v53  ;;  %v155_v16 = vmul.f32 9.0, %v2616_v17  ;;  %v214_v23 = vmul.f32 9.0, %v2497_v32  ;;  %v2635_v32 = vld [vmem:[%s3162_s0 + $0xc9] sm:$0x7f] }
  0xc6   :  { %v1219_v19 = vadd.f32 %v1193_v41, %v2142_v6  ;;  %v961_v52 = vadd.f32 %v2608_v58, %v866_v2  ;;  %v184_v45 = vadd.f32 %v154_v47, %v124_v18  ;;  %v215_v22 = vmul.f32 9.0, %v2505_v50 }
  0xc7   :  { %v1220_v10 = vadd.f32 %v1194_v20, %v2148_v15  ;;  %v962_v21 = vadd.f32 %v2587_v31, %v867_v55  ;;  %v185_v6 = vadd.f32 %v155_v16, %v125_v62  ;;  %v274_v9 = vmul.f32 10.0, %v2627_v63 }
  0xc8   :  { %v1245_v42 = vadd.f32 %v1219_v19, %v2283_v43  ;;  %v987_v12 = vadd.f32 %v961_v52, %v2279_v39  ;;  %v244_v8 = vadd.f32 %v214_v23, %v184_v45  ;;  %v275_v4 = vmul.f32 10.0, %v2635_v32 }
  0xc9   :  { %v1246_v50 = vadd.f32 %v1220_v10, %v2288_v1  ;;  %v988_v15 = vadd.f32 %v962_v21, %v2281_v61  ;;  %v245_v60 = vadd.f32 %v215_v22, %v185_v6  ;;  %v438_v26 = vadd.f32 %v2534_v51, %v2410_v13 }
  0xca   :  { %v1271_v28 = vadd.f32 %v1245_v42, %v2412_v49  ;;  %v1013_v47 = vadd.f32 %v987_v12, %v2412_v49  ;;  %v304_v41 = vadd.f32 %v274_v9, %v244_v8  ;;  %v439_v43 = vadd.f32 %v2540_v30, %v2416_v38 }
  0xcb   :  { %v1272_v2 = vadd.f32 %v1246_v50, %v2418_v25  ;;  %v1014_v18 = vadd.f32 %v988_v15, %v2418_v25  ;;  %v305_v62 = vadd.f32 %v275_v4, %v245_v60  ;;  %v649_v1 = vrot.slane %v2532_v36, 1 }
  0xcc   :  { %v1297_v20 = vadd.f32 %v1271_v28, %v2173_v40  ;;  %v1039_v55 = vadd.f32 %v1013_v47, %v2534_v51  ;;  %v334_v16 = vmax.f32 %v304_v41, 0.0  ;;  %v2655_v23 = vrot.slane %v2538_v14, 1 }
  0xcd   :  { %v1298_v19 = vadd.f32 %v1272_v2, %v2160_v44  ;;  %v1040_v52 = vadd.f32 %v1014_v18, %v2540_v30  ;;  %v335_v45 = vmax.f32 %v305_v62, 0.0  ;;  %v784_v22 = vrot.slane %v2534_v51, 2 }
  0xce   :  { %v1323_v10 = vadd.f32 %v1297_v20, %v2435_v35  ;;  %v1065_v21 = vadd.f32 %v1039_v55, %v2316_v33  ;;  %v2662_v6 = vmul.f32 -9.0, %v334_v16  ;;  %v2664_v40 = vmul.f32 -10.0, %v334_v16 }
  0xcf   :  { %v1324_v9 = vadd.f32 %v1298_v19, %v2403_v0  ;;  %v1066_v42 = vadd.f32 %v1040_v52, %v2303_v11  ;;  %v2668_v12 = vmul.f32 -9.0, %v335_v45  ;;  %v2670_v44 = vmul.f32 -10.0, %v335_v45 }
  0xd0   :  { %v1349_v8 = vadd.f32 %v1323_v10, %v2441_v37  ;;  %v1091_v4 = vadd.f32 %v1065_v21, %v2557_v46  ;;  %v466_v35 = vadd.f32 %v438_v26, %v2664_v40  ;;  %v536_v50 = vrot.slane %v2664_v40, 1 }
  0xd1   :  { %v1350_v15 = vadd.f32 %v1324_v9, %v2428_v48  ;;  %v1092_v60 = vadd.f32 %v1066_v42, %v2525_v27  ;;  %v467_v0 = vadd.f32 %v439_v43, %v2670_v44  ;;  %v2680_v28 = vrot.slane %v2670_v44, 1 }
  0xd2   :  { %v1375_v47 = vadd.f32 %v1349_v8, %v2321_v24  ;;  %v1117_v41 = vadd.f32 %v1091_v4, %v2563_v56  ;;  %v586_v2 = vadd.f32 %v2441_v37, %v466_v35  ;;  %v2687_v26 = vsel %vm502_vm0, %v649_v1, %v2655_v23 }
  0xd3   :  { %v1376_v18 = vadd.f32 %v1350_v15, %v2307_v3  ;;  %v1118_v62 = vadd.f32 %v1092_v60, %v2550_v29  ;;  %v2693_v43 = vsel %vm502_vm0, %v536_v50, %v2680_v28  ;;  %v587_v20 = vadd.f32 %v2428_v48, %v467_v0 }
  0xd4   :  { %v1401_v24 = vadd.f32 %v1375_v47, %v2466_v5  ;;  %v1143_v55 = vadd.f32 %v1117_v41, %v2466_v5  ;;  %v705_v16 = vadd.f32 %v2687_v26, %v586_v2  ;;  %v2700_v19 = vrot.slane %v2540_v30, 2 }
  0xd5   :  { %v1402_v1 = vadd.f32 %v1376_v18, %v2450_v7  ;;  %v1144_v3 = vadd.f32 %v1118_v62, %v2450_v7  ;;  %v706_v52 = vadd.f32 %v2655_v23, %v587_v20  ;;  %v907_v45 = vrot.slane %v2662_v6, 2 }
  0xd6   :  { %v1427_v10 = vadd.f32 %v1401_v24, %v2473_v59  ;;  %v1169_v21 = vadd.f32 %v1143_v55, %v2581_v54  ;;  %v745_v9 = vadd.f32 %v705_v16, %v2693_v43  ;;  %v2711_v42 = vsel %vm753_vm1, %v784_v22, %v2700_v19  ;;  %v2727_v22 = vld [vmem:[%s3162_s0 + $0xd0] sm:$0xff] }
  0xd7   :  { %v1428_v8 = vadd.f32 %v1402_v1, %v2459_v57  ;;  %v1170_v4 = vadd.f32 %v1144_v3, %v2570_v53  ;;  %v746_v35 = vadd.f32 %v706_v52, %v2680_v28  ;;  %v2717_v50 = vrot.slane %v2668_v12, 2  ;;  %v2757_v52 = vld [vmem:[%s3162_s0 + $0xd1] sm:$0xff] }
  0xd8   :  { %1453 = vst [vmem:[%s3163_s1 + $0x70] sm:$0xff] %v1427_v10  ;;  %v1195_v59 = vadd.f32 %v1169_v21, %v2608_v58  ;;  %v837_v15 = vadd.f32 %v2581_v54, %v745_v9  ;;  %v96_v57 = vmul.f32 10.0, %v2597_v34  ;;  %v97_v60 = vmul.f32 10.0, %v2616_v17  ;;  %v2746_v17 = vld [vmem:[%s3162_s0 + $0xd8] sm:$0x7f] }
  0xd9   :  { %1454 = vst [vmem:[%s3163_s1 + $0x78] sm:$0x1f] %v1428_v8  ;;  %v1196_v0 = vadd.f32 %v1170_v4, %v2587_v31  ;;  %v838_v47 = vadd.f32 %v2570_v53, %v746_v35  ;;  %v2738_v41 = vsel %vm753_vm1, %v907_v45, %v2717_v50  ;;  %v156_v2 = vmul.f32 9.0, %v2727_v22 }
  0xda   :  { %v1221_v18 = vadd.f32 %v1195_v59, %v2279_v39  ;;  %v868_v34 = vadd.f32 %v837_v15, %v2711_v42  ;;  %v126_v62 = vadd.f32 -2.0, %v96_v57  ;;  %v127_v20 = vadd.f32 -2.0, %v97_v60 }
  0xdb   :  { %v1222_v24 = vadd.f32 %v1196_v0, %v2281_v61  ;;  %v869_v55 = vadd.f32 %v838_v47, %v2700_v19  ;;  %v157_v16 = vmul.f32 9.0, %v2746_v17  ;;  %v216_v1 = vmul.f32 9.0, %v2627_v63  ;;  %v2765_v63 = vld [vmem:[%s3162_s0 + $0xd9] sm:$0x7f] }
  0xdc   :  { %v1247_v3 = vadd.f32 %v1221_v18, %v2412_v49  ;;  %v963_v39 = vadd.f32 %v2738_v41, %v868_v34  ;;  %v186_v45 = vadd.f32 %v156_v2, %v126_v62  ;;  %v217_v10 = vmul.f32 9.0, %v2635_v32 }
  0xdd   :  { %v1248_v61 = vadd.f32 %v1222_v24, %v2418_v25  ;;  %v964_v21 = vadd.f32 %v2717_v50, %v869_v55  ;;  %v187_v49 = vadd.f32 %v157_v16, %v127_v20  ;;  %v276_v9 = vmul.f32 10.0, %v2757_v52 }
  0xde   :  { %v1273_v8 = vadd.f32 %v1247_v3, %v2534_v51  ;;  %v989_v4 = vadd.f32 %v963_v39, %v2410_v13  ;;  %v246_v35 = vadd.f32 %v216_v1, %v186_v45  ;;  %v277_v59 = vmul.f32 10.0, %v2765_v63 }
  0xdf   :  { %v1274_v32 = vadd.f32 %v1248_v61, %v2540_v30  ;;  %v990_v25 = vadd.f32 %v964_v21, %v2416_v38  ;;  %v247_v15 = vadd.f32 %v217_v10, %v187_v49  ;;  %v440_v57 = vadd.f32 %v2664_v40, %v2532_v36 }
  0xe0   :  { %v1299_v60 = vadd.f32 %v1273_v8, %v2316_v33  ;;  %v1015_v0 = vadd.f32 %v989_v4, %v2534_v51  ;;  %v306_v47 = vadd.f32 %v276_v9, %v246_v35  ;;  %v441_v2 = vadd.f32 %v2670_v44, %v2538_v14 }
  0xe1   :  { %v1300_v18 = vadd.f32 %v1274_v32, %v2303_v11  ;;  %v1016_v34 = vadd.f32 %v990_v25, %v2540_v30  ;;  %v307_v62 = vadd.f32 %v277_v59, %v247_v15  ;;  %v652_v20 = vrot.slane %v2662_v6, 1 }
  0xe2   :  { %v1325_v24 = vadd.f32 %v1299_v60, %v2557_v46  ;;  %v1041_v55 = vadd.f32 %v1015_v0, %v2664_v40  ;;  %v336_v16 = vmax.f32 %v306_v47, 0.0  ;;  %v2785_v33 = vrot.slane %v2668_v12, 1 }
  0xe3   :  { %v1326_v1 = vadd.f32 %v1300_v18, %v2525_v27  ;;  %v1042_v3 = vadd.f32 %v1016_v34, %v2670_v44  ;;  %v337_v39 = vmax.f32 %v307_v62, 0.0  ;;  %v787_v11 = vrot.slane %v2664_v40, 2 }
  0xe4   :  { %v1351_v45 = vadd.f32 %v1325_v24, %v2563_v56  ;;  %v1067_v10 = vadd.f32 %v1041_v55, %v2441_v37  ;;  %v2792_v61 = vmul.f32 -9.0, %v336_v16  ;;  %v2794_v46 = vmul.f32 -10.0, %v336_v16 }
  0xe5   :  { %v1352_v21 = vadd.f32 %v1326_v1, %v2550_v29  ;;  %v1068_v49 = vadd.f32 %v1042_v3, %v2428_v48  ;;  %v2798_v9 = vmul.f32 -9.0, %v337_v39  ;;  %v2800_v27 = vmul.f32 -10.0, %v337_v39 }
  0xe6   :  { %v1377_v8 = vadd.f32 %v1351_v45, %v2466_v5  ;;  %v1093_v4 = vadd.f32 %v1067_v10, %v2687_v26  ;;  %v468_v35 = vadd.f32 %v440_v57, %v2794_v46  ;;  %v539_v59 = vrot.slane %v2794_v46, 1  ;;  %v2839_v45 = vld [vmem:[%s3162_s0 + $0xe0] sm:$0xff] }
  0xe7   :  { %v1378_v32 = vadd.f32 %v1352_v21, %v2450_v7  ;;  %v1094_v25 = vadd.f32 %v1068_v49, %v2655_v23  ;;  %v469_v15 = vadd.f32 %v441_v2, %v2800_v27  ;;  %v2810_v60 = vrot.slane %v2800_v27, 1 }
  0xe8   :  { %v1403_v0 = vadd.f32 %v1377_v8, %v2581_v54  ;;  %v1119_v47 = vadd.f32 %v1093_v4, %v2693_v43  ;;  %v588_v5 = vadd.f32 %v2563_v56, %v468_v35  ;;  %v2817_v57 = vsel %vm502_vm0, %v652_v20, %v2785_v33  ;;  %v2861_v4 = vld [vmem:[%s3162_s0 + $0xe8] sm:$0x7f] }
  0xe9   :  { %v1404_v18 = vadd.f32 %v1378_v32, %v2570_v53  ;;  %v1120_v7 = vadd.f32 %v1094_v25, %v2680_v28  ;;  %v2823_v2 = vsel %vm502_vm0, %v539_v59, %v2810_v60  ;;  %v589_v34 = vadd.f32 %v2550_v29, %v469_v15 }
  0xea   :  { %v1429_v62 = vadd.f32 %v1403_v0, %v2608_v58  ;;  %v1145_v24 = vadd.f32 %v1119_v47, %v2581_v54  ;;  %v707_v55 = vadd.f32 %v2817_v57, %v588_v5  ;;  %v2830_v16 = vrot.slane %v2670_v44, 2 }
  0xeb   :  { %v1430_v20 = vadd.f32 %v1404_v18, %v2587_v31  ;;  %v1146_v1 = vadd.f32 %v1120_v7, %v2570_v53  ;;  %v708_v3 = vadd.f32 %v2785_v33, %v589_v34  ;;  %v910_v39 = vrot.slane %v2792_v61, 2  ;;  %v2884_v34 = vld [vmem:[%s3162_s0 + $0xe9] sm:$0x7f] }
  0xec   :  { %1455 = vst [vmem:[%s3163_s1 + $0x80] sm:$0xff] %v1429_v62  ;;  %v1171_v58 = vadd.f32 %v1145_v24, %v2711_v42  ;;  %v747_v10 = vadd.f32 %v707_v55, %v2823_v2  ;;  %v2848_v31 = vsel %vm753_vm1, %v787_v11, %v2830_v16  ;;  %v2851_v21 = vrot.slane %v2798_v9, 2 }
  0xed   :  { %1456 = vst [vmem:[%s3163_s1 + $0x88] sm:$0x1f] %v1430_v20  ;;  %v1172_v49 = vadd.f32 %v1146_v1, %v2700_v19  ;;  %v748_v8 = vadd.f32 %v708_v3, %v2810_v60  ;;  %v98_v35 = vmul.f32 10.0, %v2727_v22  ;;  %v99_v11 = vmul.f32 10.0, %v2746_v17  ;;  %v2877_v22 = vld [vmem:[%s3162_s0 + $0xe1] sm:$0xff] }
  0xee   :  { %v1197_v59 = vadd.f32 %v1171_v58, %v2738_v41  ;;  %v839_v32 = vadd.f32 %v2711_v42, %v747_v10  ;;  %v2869_v25 = vsel %vm753_vm1, %v910_v39, %v2851_v21  ;;  %v158_v15 = vmul.f32 9.0, %v2839_v45 }
  0xef   :  { %v1198_v0 = vadd.f32 %v1172_v49, %v2717_v50  ;;  %v840_v47 = vadd.f32 %v2700_v19, %v748_v8  ;;  %v128_v17 = vadd.f32 -2.0, %v98_v35  ;;  %v129_v5 = vadd.f32 -2.0, %v99_v11 }
  0xf0   :  { %v1223_v18 = vadd.f32 %v1197_v59, %v2410_v13  ;;  %v870_v7 = vadd.f32 %v839_v32, %v2848_v31  ;;  %v159_v62 = vmul.f32 9.0, %v2861_v4  ;;  %v218_v24 = vmul.f32 9.0, %v2757_v52 }
  0xf1   :  { %v1224_v55 = vadd.f32 %v1198_v0, %v2416_v38  ;;  %v871_v20 = vadd.f32 %v840_v47, %v2830_v16  ;;  %v188_v1 = vadd.f32 %v158_v15, %v128_v17  ;;  %v219_v3 = vmul.f32 9.0, %v2765_v63 }
  0xf2   :  { %v1249_v13 = vadd.f32 %v1223_v18, %v2534_v51  ;;  %v965_v39 = vadd.f32 %v2869_v25, %v870_v7  ;;  %v189_v58 = vadd.f32 %v159_v62, %v129_v5  ;;  %v278_v10 = vmul.f32 10.0, %v2877_v22 }
  0xf3   :  { %v1250_v49 = vadd.f32 %v1224_v55, %v2540_v30  ;;  %v966_v8 = vadd.f32 %v2851_v21, %v871_v20  ;;  %v248_v35 = vadd.f32 %v218_v24, %v188_v1  ;;  %v279_v52 = vmul.f32 10.0, %v2884_v34 }
  0xf4   :  { %v1275_v38 = vadd.f32 %v1249_v13, %v2664_v40  ;;  %v991_v11 = vadd.f32 %v965_v39, %v2532_v36  ;;  %v249_v59 = vadd.f32 %v219_v3, %v189_v58  ;;  %v442_v51 = vadd.f32 %v2794_v46, %v2662_v6 }
  0xf5   :  { %v1276_v63 = vadd.f32 %v1250_v49, %v2670_v44  ;;  %v992_v32 = vadd.f32 %v966_v8, %v2538_v14  ;;  %v308_v15 = vadd.f32 %v278_v10, %v248_v35  ;;  %v443_v30 = vadd.f32 %v2800_v27, %v2668_v12 }
  0xf6   :  { %v1301_v0 = vadd.f32 %v1275_v38, %v2441_v37  ;;  %v1017_v47 = vadd.f32 %v991_v11, %v2664_v40  ;;  %v309_v17 = vadd.f32 %v279_v52, %v249_v59  ;;  %v655_v5 = vrot.slane %v2792_v61, 1 }
  0xf7   :  { %v1302_v18 = vadd.f32 %v1276_v63, %v2428_v48  ;;  %v1018_v7 = vadd.f32 %v992_v32, %v2670_v44  ;;  %v338_v62 = vmax.f32 %v308_v15, 0.0  ;;  %v2911_v24 = vrot.slane %v2798_v9, 1 }
  0xf8   :  { %v1327_v55 = vadd.f32 %v1301_v0, %v2687_v26  ;;  %v1043_v20 = vadd.f32 %v1017_v47, %v2794_v46  ;;  %v339_v1 = vmax.f32 %v309_v17, 0.0  ;;  %v790_v37 = vrot.slane %v2794_v46, 2 }
  0xf9   :  { %v1328_v3 = vadd.f32 %v1302_v18, %v2655_v23  ;;  %v1044_v13 = vadd.f32 %v1018_v7, %v2800_v27  ;;  %v2918_v39 = vmul.f32 -10.0, %v338_v62  ;;  %v2920_v48 = vmul.f32 -9.0, %v338_v62 }
  0xfa   :  { %v1353_v58 = vadd.f32 %v1327_v55, %v2693_v43  ;;  %v1069_v10 = vadd.f32 %v1043_v20, %v2563_v56  ;;  %v2924_v49 = vmul.f32 -10.0, %v339_v1  ;;  %v595_v26 = vmul.f32 -9.0, %v339_v1 }
  0xfb   :  { %v1354_v8 = vadd.f32 %v1328_v3, %v2680_v28  ;;  %v1070_v35 = vadd.f32 %v1044_v13, %v2550_v29  ;;  %v470_v52 = vadd.f32 %v442_v51, %v2918_v39  ;;  %v2931_v23 = vsel %vm502_vm0, %v655_v5, %v2911_v24 }
  0xfc   :  { %v1379_v38 = vadd.f32 %v1353_v58, %v2581_v54  ;;  %v1095_v11 = vadd.f32 %v1069_v10, %v2817_v57  ;;  %v471_v59 = vadd.f32 %v443_v30, %v2924_v49  ;;  %v658_v63 = vrot.slane %v2920_v48, 1 }
  0xfd   :  { %v1380_v32 = vadd.f32 %v1354_v8, %v2570_v53  ;;  %v1096_v15 = vadd.f32 %v1070_v35, %v2785_v33  ;;  %v590_v0 = vadd.f32 %v2693_v43, %v470_v52  ;;  %v2940_v47 = vrot.slane %v595_v26, 1 }
  0xfe   :  { %v1405_v51 = vadd.f32 %v1379_v38, %v2711_v42  ;;  %v1121_v17 = vadd.f32 %v1095_v11, %v2823_v2  ;;  %v591_v54 = vadd.f32 %v2680_v28, %v471_v59  ;;  %v717_v5 = vrot.slane %v2918_v39, 1  ;;  %v39_v59 = vld [vmem:[%s3162_s0 + $0xf8] sm:$0x7f] }
  0xff   :  { %v1406_v30 = vadd.f32 %v1380_v32, %v2700_v19  ;;  %v1122_v18 = vadd.f32 %v1096_v15, %v2810_v60  ;;  %v709_v53 = vadd.f32 %v2931_v23, %v590_v0  ;;  %v2950_v7 = vrot.slane %v2924_v49, 1 }
 0x100   :  { %v1431_v62 = vadd.f32 %v1405_v51, %v2738_v41  ;;  %v1147_v55 = vadd.f32 %v1121_v17, %v2711_v42  ;;  %v710_v20 = vadd.f32 %v2911_v24, %v591_v54  ;;  %v2956_v1 = vrot.slane %v2800_v27, 2  ;;  %v38_v41 = vld [vmem:[%s3162_s0 + $0xf0] sm:$0xff] }
 0x101   :  { %v1432_v3 = vadd.f32 %v1406_v30, %v2717_v50  ;;  %v1148_v13 = vadd.f32 %v1122_v18, %v2700_v19  ;;  %v2962_v58 = vsel %vm502_vm0, %v717_v5, %v2950_v7  ;;  %v913_v10 = vrot.slane %v2920_v48, 2 }
 0x102   :  { %1457 = vst [vmem:[%s3163_s1 + $0x90] sm:$0xff] %v1431_v62  ;;  %v1173_v8 = vadd.f32 %v1147_v55, %v2848_v31  ;;  %v749_v50 = vadd.f32 %v2962_v58, %v709_v53  ;;  %v750_v35 = vadd.f32 %v2950_v7, %v710_v20  ;;  %v2976_v52 = vsel %vm753_vm1, %v790_v37, %v2956_v1  ;;  %v70_v53 = vld [vmem:[%s3162_s0 + $0xf1] sm:$0xff]  ;;  %v71_v62 = vld [vmem:[%s3162_s0 + $0xf9] sm:$0x7f] }
 0x103   :  { %1458 = vst [vmem:[%s3163_s1 + $0x98] sm:$0x1f] %v1432_v3  ;;  %v1174_v38 = vadd.f32 %v1148_v13, %v2830_v16  ;;  %v2982_v11 = vrot.slane %v595_v26, 2  ;;  %v100_v32 = vmul.f32 10.0, %v2839_v45  ;;  %v101_v15 = vmul.f32 10.0, %v2861_v4 }
 0x104   :  { %v1199_v0 = vadd.f32 %v1173_v8, %v2869_v25  ;;  %v841_v37 = vadd.f32 %v2848_v31, %v749_v50  ;;  %v842_v51 = vadd.f32 %v2830_v16, %v750_v35  ;;  %v160_v17 = vmul.f32 9.0, %v38_v41 }
 0x105   :  { %v1200_v54 = vadd.f32 %v1174_v38, %v2851_v21  ;;  %v2995_v26 = vsel %vm753_vm1, %v913_v10, %v2982_v11  ;;  %v130_v5 = vadd.f32 -2.0, %v100_v32  ;;  %v131_v30 = vadd.f32 -2.0, %v101_v15 }
 0x106   :  { %v1225_v18 = vadd.f32 %v1199_v0, %v2532_v36  ;;  %v872_v45 = vadd.f32 %v841_v37, %v2976_v52  ;;  %v873_v4 = vadd.f32 %v842_v51, %v2956_v1  ;;  %v161_v55 = vmul.f32 9.0, %v39_v59 }
 0x107   :  { %v1226_v20 = vadd.f32 %v1200_v54, %v2538_v14  ;;  %v190_v3 = vadd.f32 %v160_v17, %v130_v5  ;;  %v220_v13 = vmul.f32 9.0, %v2877_v22  ;;  %v221_v36 = vmul.f32 9.0, %v2884_v34 }
 0x108   :  { %v1251_v10 = vadd.f32 %v1225_v18, %v2664_v40  ;;  %v967_v41 = vadd.f32 %v2995_v26, %v872_v45  ;;  %v968_v8 = vadd.f32 %v2982_v11, %v873_v4  ;;  %v191_v50 = vadd.f32 %v161_v55, %v131_v30 }
 0x109   :  { %v1252_v35 = vadd.f32 %v1226_v20, %v2670_v44  ;;  %v250_v38 = vadd.f32 %v220_v13, %v190_v3  ;;  %v280_v32 = vmul.f32 10.0, %v70_v53  ;;  %v281_v15 = vmul.f32 10.0, %v71_v62 }
 0x10a   :  { %v1277_v59 = vadd.f32 %v1251_v10, %v2794_v46  ;;  %v993_v14 = vadd.f32 %v967_v41, %v2662_v6  ;;  %v994_v22 = vadd.f32 %v968_v8, %v2668_v12  ;;  %v251_v0 = vadd.f32 %v221_v36, %v191_v50 }
 0x10b   :  { %v1278_v34 = vadd.f32 %v1252_v35, %v2800_v27  ;;  %v310_v40 = vadd.f32 %v280_v32, %v250_v38  ;;  %v444_v37 = vadd.f32 %v2918_v39, %v2792_v61  ;;  %v445_v18 = vadd.f32 %v2924_v49, %v2798_v9 }
 0x10c   :  { %v1303_v51 = vadd.f32 %v1277_v59, %v2563_v56  ;;  %v1019_v44 = vadd.f32 %v993_v14, %v2794_v46  ;;  %v1020_v17 = vadd.f32 %v994_v22, %v2800_v27  ;;  %v311_v54 = vadd.f32 %v281_v15, %v251_v0 }
 0x10d   :  { %v1304_v5 = vadd.f32 %v1278_v34, %v2550_v29  ;;  %v340_v30 = vmax.f32 %v310_v40, 0.0  ;;  %v3029_v45 = vsel %vm502_vm0, %v658_v63, %v2940_v47  ;;  %v845_v20 = vrot.slane %v2918_v39, 2 }
 0x10e   :  { %v1329_v4 = vadd.f32 %v1303_v51, %v2817_v57  ;;  %v1045_v56 = vadd.f32 %v1019_v44, %v2918_v39  ;;  %v1046_v53 = vadd.f32 %v1020_v17, %v2924_v49  ;;  %v341_v62 = vmax.f32 %v311_v54, 0.0 }
 0x10f   :  { %v1330_v55 = vadd.f32 %v1304_v5, %v2785_v33  ;;  %v3035_v29 = vmul.f32 -10.0, %v340_v30  ;;  %v3039_v3 = vrot.slane %v2924_v49, 2  ;;  %v876_v41 = vmul.f32 -9.0, %v340_v30 }
 0x110   :  { %v1355_v48 = vadd.f32 %v1329_v4, %v2823_v2  ;;  %v1071_v63 = vadd.f32 %v1045_v56, %v2693_v43  ;;  %v1072_v57 = vadd.f32 %v1046_v53, %v2680_v28  ;;  %v3044_v13 = vmul.f32 -10.0, %v341_v62 }
 0x111   :  { %v1356_v36 = vadd.f32 %v1330_v55, %v2810_v60  ;;  %v472_v10 = vadd.f32 %v3035_v29, %v444_v37  ;;  %v720_v33 = vrot.slane %v3035_v29, 1  ;;  %v877_v14 = vmul.f32 -9.0, %v341_v62 }
 0x112   :  { %v1381_v8 = vadd.f32 %v1355_v48, %v2711_v42  ;;  %v1097_v50 = vadd.f32 %v1071_v63, %v2931_v23  ;;  %v1098_v35 = vadd.f32 %v1072_v57, %v2911_v24  ;;  %v473_v38 = vadd.f32 %v3044_v13, %v445_v18 }
 0x113   :  { %v1382_v32 = vadd.f32 %v1356_v36, %v2700_v19  ;;  %v592_v15 = vadd.f32 %v2823_v2, %v472_v10  ;;  %v3056_v59 = vrot.slane %v3044_v13, 1  ;;  %v916_v51 = vrot.slane %v876_v41, 2 }
 0x114   :  { %v1407_v22 = vadd.f32 %v1381_v8, %v2848_v31  ;;  %v1123_v0 = vadd.f32 %v1097_v50, %v2962_v58  ;;  %v1124_v42 = vadd.f32 %v1098_v35, %v2950_v7  ;;  %v593_v34 = vadd.f32 %v2810_v60, %v473_v38 }
 0x115   :  { %v1408_v40 = vadd.f32 %v1382_v32, %v2830_v16  ;;  %v711_v37 = vadd.f32 %v3029_v45, %v592_v15  ;;  %v3066_v19 = vsel %vm502_vm0, %v720_v33, %v3056_v59  ;;  %v3074_v4 = vrot.slane %v877_v14, 2 }
 0x116   :  { %v1433_v44 = vadd.f32 %v1407_v22, %v2869_v25  ;;  %v1149_v17 = vadd.f32 %v1123_v0, %v2848_v31  ;;  %v1150_v54 = vadd.f32 %v1124_v42, %v2830_v16  ;;  %v712_v5 = vadd.f32 %v2940_v47, %v593_v34 }
 0x117   :  { %v1434_v30 = vadd.f32 %v1408_v40, %v2851_v21  ;;  %v751_v18 = vadd.f32 %v3066_v19, %v711_v37  ;;  %v3084_v62 = vsel %vm753_vm1, %v845_v20, %v3039_v3  ;;  %v918_v57 = vsel %vm753_vm1, %v916_v51, %v3074_v4 }
 0x118   :  { %1459 = vst [vmem:[%s3163_s1 + $0xa0] sm:$0xff] %v1433_v44  ;;  %v1175_v56 = vadd.f32 %v1149_v17, %v2976_v52  ;;  %v1176_v25 = vadd.f32 %v1150_v54, %v2956_v1  ;;  %v752_v53 = vadd.f32 %v3056_v59, %v712_v5 }
 0x119   :  { %1460 = vst [vmem:[%s3163_s1 + $0xa8] sm:$0x1f] %v1434_v30  ;;  %v843_v21 = vadd.f32 %v2976_v52, %v751_v18 }
 0x11a   :  { %v1201_v55 = vadd.f32 %v1175_v56, %v2995_v26  ;;  %v1202_v48 = vadd.f32 %v1176_v25, %v2982_v11  ;;  %v844_v63 = vadd.f32 %v2956_v1, %v752_v53 }
 0x11b   :  { %v874_v36 = vadd.f32 %v3084_v62, %v843_v21 }
 0x11c   :  { %v1227_v20 = vadd.f32 %v1201_v55, %v2662_v6  ;;  %v1228_v10 = vadd.f32 %v1202_v48, %v2668_v12  ;;  %v875_v33 = vadd.f32 %v3039_v3, %v844_v63 }
 0x11d   :  { %v969_v41 = vadd.f32 %v918_v57, %v874_v36 }
 0x11e   :  { %v1253_v8 = vadd.f32 %v1227_v20, %v2794_v46  ;;  %v1254_v50 = vadd.f32 %v1228_v10, %v2800_v27  ;;  %v970_v35 = vadd.f32 %v3074_v4, %v875_v33 }
 0x11f   :  { %v995_v38 = vadd.f32 %v969_v41, %v2792_v61 }
 0x120   :  { %v1279_v32 = vadd.f32 %v1253_v8, %v2918_v39  ;;  %v1280_v15 = vadd.f32 %v1254_v50, %v2924_v49  ;;  %v996_v14 = vadd.f32 %v970_v35, %v2798_v9 }
 0x121   :  { %v1021_v6 = vadd.f32 %v995_v38, %v2918_v39 }
 0x122   :  { %v1305_v12 = vadd.f32 %v1279_v32, %v2693_v43  ;;  %v1306_v22 = vadd.f32 %v1280_v15, %v2680_v28  ;;  %v1022_v46 = vadd.f32 %v996_v14, %v2924_v49 }
 0x123   :  { %v1047_v27 = vadd.f32 %v1021_v6, %v3035_v29 }
 0x124   :  { %v1331_v0 = vadd.f32 %v1305_v12, %v2931_v23  ;;  %v1332_v42 = vadd.f32 %v1306_v22, %v2911_v24  ;;  %v1048_v34 = vadd.f32 %v1022_v46, %v3044_v13 }
 0x125   :  { %v1073_v40 = vadd.f32 %v1047_v27, %v2823_v2 }
 0x126   :  { %v1357_v37 = vadd.f32 %v1331_v0, %v2962_v58  ;;  %v1358_v51 = vadd.f32 %v1332_v42, %v2950_v7  ;;  %v1074_v43 = vadd.f32 %v1048_v34, %v2810_v60 }
 0x127   :  { %v1099_v28 = vadd.f32 %v1073_v40, %v3029_v45 }
 0x128   :  { %v1383_v44 = vadd.f32 %v1357_v37, %v2848_v31  ;;  %v1384_v17 = vadd.f32 %v1358_v51, %v2830_v16  ;;  %v1100_v23 = vadd.f32 %v1074_v43, %v2940_v47 }
 0x129   :  { %v1125_v24 = vadd.f32 %v1099_v28, %v3066_v19 }
 0x12a   :  { %v1409_v54 = vadd.f32 %v1383_v44, %v2976_v52  ;;  %v1410_v5 = vadd.f32 %v1384_v17, %v2956_v1  ;;  %v1126_v58 = vadd.f32 %v1100_v23, %v3056_v59 }
 0x12b   :  { %v1151_v7 = vadd.f32 %v1125_v24, %v2976_v52 }
 0x12c   :  { %v1435_v30 = vadd.f32 %v1409_v54, %v2995_v26  ;;  %v1436_v18 = vadd.f32 %v1410_v5, %v2982_v11  ;;  %v1152_v31 = vadd.f32 %v1126_v58, %v2956_v1 }
 0x12d   :  { %v1177_v16 = vadd.f32 %v1151_v7, %v3084_v62 }
 0x12e   :  { %1461 = vst [vmem:[%s3163_s1 + $0xb0] sm:$0xff] %v1435_v30  ;;  %1462 = vst [vmem:[%s3163_s1 + $0xb8] sm:$0x1f] %v1436_v18  ;;  %v1178_v56 = vadd.f32 %v1152_v31, %v3039_v3 }
 0x12f   :  { %v1203_v25 = vadd.f32 %v1177_v16, %v918_v57 }
 0x130   :  { %v1204_v53 = vadd.f32 %v1178_v56, %v3074_v4 }
 0x131   :  { %v1229_v26 = vadd.f32 %v1203_v25, %v2792_v61 }
 0x132   :  { %v1230_v11 = vadd.f32 %v1204_v53, %v2798_v9 }
 0x133   :  { %v1255_v21 = vadd.f32 %v1229_v26, %v2918_v39 }
 0x134   :  { %v1256_v55 = vadd.f32 %v1230_v11, %v2924_v49 }
 0x135   :  { %v1281_v48 = vadd.f32 %v1255_v21, %v3035_v29 }
 0x136   :  { %v1282_v63 = vadd.f32 %v1256_v55, %v3044_v13 }
 0x137   :  { %v1307_v36 = vadd.f32 %v1281_v48, %v2823_v2 }
 0x138   :  { %v1308_v20 = vadd.f32 %v1282_v63, %v2810_v60 }
 0x139   :  { %v1333_v10 = vadd.f32 %v1307_v36, %v3029_v45 }
 0x13a   :  { %v1334_v33 = vadd.f32 %v1308_v20, %v2940_v47 }
 0x13b   :  { %v1359_v61 = vadd.f32 %v1333_v10, %v3066_v19 }
 0x13c   :  { %v1360_v9 = vadd.f32 %v1334_v33, %v3056_v59 }
 0x13d   :  { %v1385_v39 = vadd.f32 %v1359_v61, %v2976_v52 }
 0x13e   :  { %v1386_v49 = vadd.f32 %v1360_v9, %v2956_v1 }
 0x13f   :  { %v1411_v29 = vadd.f32 %v1385_v39, %v3084_v62 }
 0x140   :  { %v1412_v13 = vadd.f32 %v1386_v49, %v3039_v3 }
 0x141   :  { %v1437_v41 = vadd.f32 %v1411_v29, %v918_v57 }
 0x142   :  { %v1438_v2 = vadd.f32 %v1412_v13, %v3074_v4 }
 0x143   :  { %1463 = vst [vmem:[%s3163_s1 + $0xc0] sm:$0xff] %v1437_v41 }
 0x144   :  { %1464 = vst [vmem:[%s3163_s1 + $0xc8] sm:$0x1f] %v1438_v2 }

</bundles_post_ra>
